<compile_context>
chip_gen: v6e
topology: v6e:2x2x1
jax: 0.10.0
libtpu: 0.0.40
codegen_flags: <defaults>
</compile_context>

<pallas_src>
import jax
import jax.numpy as jnp
from jax.experimental import pallas as pl
from jax.experimental.pallas import tpu as pltpu

_PREC = jax.lax.Precision.HIGHEST


def _coordatt_kernel(x_ref, w1_ref, s_ref, t_ref, wh_ref, bh_ref,
                     ww_ref, bw_ref, p_ref, th_ref, tw_ref, o_ref):
    # x_ref block: (NB, C, H*W)  -- lane-dense last dim.
    w1 = w1_ref[...]      # (mip, C)
    s = s_ref[...]        # (mip, 1)  gamma / sqrt(var + eps)
    t = t_ref[...]        # (mip, 1)  s*b1 + beta - mean*s   (conv1 bias folded in)
    wh = wh_ref[...]      # (oup, mip)
    bh = bh_ref[...]      # (oup, 1)
    ww = ww_ref[...]      # (oup, mip)
    bw = bw_ref[...]      # (oup, 1)
    P = p_ref[...]        # (HW, H+W)   [mean over W | mean over H]
    Th = th_ref[...]      # (H+W, HW)   one-hot expansion of the H half, rows H.. are 0
    Tw = tw_ref[...]      # (H+W, HW)   one-hot expansion of the W half, rows ..H are 0

    nb = x_ref.shape[0]
    for i in range(nb):   # static unroll; nb is small (default keeps >=2 grid steps)
        xi = x_ref[i].astype(jnp.float32)                      # (C, HW)

        # Fused adaptive pools: pooled = [pool_h | pool_w]  -> (C, H+W), one MXU push.
        pooled = jnp.dot(xi, P, precision=_PREC,
                         preferred_element_type=jnp.float32)

        # conv1 (1x1) + folded bias/BN(eval) + h_swish on the concatenated strip.
        y = jnp.dot(w1, pooled, precision=_PREC,
                    preferred_element_type=jnp.float32)        # (mip, H+W)
        y = y * s + t
        y = y * (jnp.clip(y + 3.0, 0.0, 6.0) * (1.0 / 6.0))    # h_swish

        # conv_h / conv_w (1x1) + sigmoid over the full (H+W) strip; the padded
        # expansion matrices select the H / W halves, so no sub-128 lane slicing.
        a_h = jax.nn.sigmoid(jnp.dot(wh, y, precision=_PREC,
                                     preferred_element_type=jnp.float32) + bh)
        a_w = jax.nn.sigmoid(jnp.dot(ww, y, precision=_PREC,
                                     preferred_element_type=jnp.float32) + bw)

        # Expand gates back to flat (C, HW) with 0/1 matmuls (MXU; keeps the
        # memory-bound elementwise gating fully lane-dense).
        g_h = jnp.dot(a_h, Th, precision=_PREC,
                      preferred_element_type=jnp.float32)      # (C, HW): a_h[c, l//W]
        g_w = jnp.dot(a_w, Tw, precision=_PREC,
                      preferred_element_type=jnp.float32)      # (C, HW): a_w[c, l%W]

        o_ref[i] = (xi * g_h * g_w).astype(o_ref.dtype)


def coord_att(x, params, *, batch_block=None):
    n, c, h, w = x.shape
    (w1, b1, bn_gamma, bn_beta, bn_mean, bn_var, wh, bh, ww, bw) = params
    mip = w1.shape[0]
    oup = wh.shape[0]
    eps = 1e-5
    hw = h * w

    # Fold conv1 bias + BatchNorm (inference semantics) into one per-channel affine.
    bn_s = bn_gamma / jnp.sqrt(bn_var + eps)
    s2 = bn_s.reshape(mip, 1)
    t2 = (bn_s * b1 + bn_beta - bn_mean * bn_s).reshape(mip, 1)
    bh2 = bh.reshape(oup, 1)
    bw2 = bw.reshape(oup, 1)

    # Flat-index helpers: lane l of the (C, HW) slab is (row=l//W, col=l%W).
    l = jnp.arange(hw)
    row = l // w
    col = l % w
    jH = jnp.arange(h)
    jW = jnp.arange(w)
    # Pooling matrix: x(C,HW) @ P -> [mean over W per row | mean over H per col].
    ph = (row[:, None] == jH[None, :]).astype(jnp.float32) / w          # (HW, H)
    pw = (col[:, None] == jW[None, :]).astype(jnp.float32) / h          # (HW, W)
    P = jnp.concatenate([ph, pw], axis=1)                               # (HW, H+W)
    # One-hot expansion matrices (padded so the H / W halves self-select).
    th = (jH[:, None] == row[None, :]).astype(jnp.float32)              # (H, HW)
    tw = (jW[:, None] == col[None, :]).astype(jnp.float32)              # (W, HW)
    Th = jnp.concatenate([th, jnp.zeros((w, hw), jnp.float32)], axis=0)  # (H+W, HW)
    Tw = jnp.concatenate([jnp.zeros((h, hw), jnp.float32), tw], axis=0)  # (H+W, HW)

    # Batch elements per grid step: grow the DMA toward ~2 MiB but keep >= 2
    # grid steps when possible (megacore / v7x dual-TC sharding).
    if batch_block is None:
        slab_bytes = c * hw * x.dtype.itemsize
        keep_two_steps = n // 2 if n >= 2 else 1
        grow = max(1, (2 * 2**20) // max(slab_bytes, 1))
        batch_block = max(1, min(keep_two_steps, grow))
    batch_block = max(1, min(batch_block, n))
    while n % batch_block:
        batch_block -= 1
    nb = batch_block
    grid = (n // nb,)

    x_flat = x.reshape(n, c, hw)   # free reshape of contiguous NCHW -> lane-dense

    # Explicit VMEM budget (v7x has only 64 MiB/TC): in+out double-buffered
    # blocks, constant matrices, plus headroom for intermediates.
    block_bytes = nb * c * hw * x.dtype.itemsize
    const_bytes = (hw * (h + w) + 2 * (h + w) * hw) * 4
    vmem_limit = int(min(64 * 2**20,
                         max(32 * 2**20, 8 * block_bytes + 2 * const_bytes + (4 << 20))))

    const = lambda shape: pl.BlockSpec(shape, lambda b: (0,) * len(shape))

    out_flat = pl.pallas_call(
        _coordatt_kernel,
        out_shape=jax.ShapeDtypeStruct((n, c, hw), x.dtype),
        grid=grid,
        in_specs=[
            pl.BlockSpec((nb, c, hw), lambda b: (b, 0, 0)),  # x (lane-dense)
            const((mip, c)),      # conv1 weight
            const((mip, 1)),      # fused BN scale
            const((mip, 1)),      # fused BN shift (conv1 bias folded in)
            const((oup, mip)),    # conv_h weight
            const((oup, 1)),      # conv_h bias
            const((oup, mip)),    # conv_w weight
            const((oup, 1)),      # conv_w bias
            const((hw, h + w)),   # pooling matrix P
            const((h + w, hw)),   # H-gate expansion
            const((h + w, hw)),   # W-gate expansion
        ],
        out_specs=pl.BlockSpec((nb, c, hw), lambda b: (b, 0, 0)),
        compiler_params=pltpu.CompilerParams(
            dimension_semantics=("parallel",),
            vmem_limit_bytes=vmem_limit),
    )(x_flat, w1, s2, t2, wh, bh2, ww, bw2, P, Th, Tw)

    return out_flat.reshape(n, c, h, w)


def init_params(key, inp, oup, reduction=32):
    mip = max(8, inp // reduction)
    ks = jax.random.split(key, 8)
    # 1x1 conv weights: (out_ch, in_ch, 1, 1) in PyTorch -> stored as (out_ch, in_ch)
    w1 = jax.random.normal(ks[0], (mip, inp), jnp.float32) * 0.1
    b1 = jax.random.normal(ks[1], (mip,), jnp.float32) * 0.1
    bn_gamma = 1.0 + 0.1 * jax.random.normal(ks[2], (mip,), jnp.float32)
    bn_beta = 0.1 * jax.random.normal(ks[3], (mip,), jnp.float32)
    bn_mean = 0.1 * jax.random.normal(ks[4], (mip,), jnp.float32)
    bn_var = jnp.abs(1.0 + 0.1 * jax.random.normal(ks[5], (mip,), jnp.float32))
    wh = jax.random.normal(ks[6], (oup, mip), jnp.float32) * 0.1
    bh = jnp.zeros((oup,), jnp.float32)
    ww = jax.random.normal(ks[7], (oup, mip), jnp.float32) * 0.1
    bw = jnp.zeros((oup,), jnp.float32)
    return (w1, b1, bn_gamma, bn_beta, bn_mean, bn_var, wh, bh, ww, bw)


def coord_att_ref(x, params):
    """Pure-JAX reference matching the PyTorch forward (BN in eval mode)."""
    (w1, b1, g, bta, mu, var, wh, bh, ww, bw) = params
    eps = 1e-5
    n, c, h, w = x.shape
    hp = jax.lax.Precision.HIGHEST
    x_h = jnp.mean(x, axis=3, keepdims=True)                        # (n,c,h,1)
    x_w = jnp.mean(x, axis=2, keepdims=True).transpose(0, 1, 3, 2)  # (n,c,w,1)
    y = jnp.concatenate([x_h, x_w], axis=2)                         # (n,c,h+w,1)
    y = jnp.einsum('oc,nchw->nohw', w1, y, precision=hp) + b1[None, :, None, None]
    y = (y - mu[None, :, None, None]) / jnp.sqrt(var + eps)[None, :, None, None] \
        * g[None, :, None, None] + bta[None, :, None, None]
    y = y * (jnp.clip(y + 3.0, 0.0, 6.0) / 6.0)
    yh, yw = y[:, :, :h, :], y[:, :, h:, :].transpose(0, 1, 3, 2)
    a_h = jax.nn.sigmoid(jnp.einsum('om,nmhw->nohw', wh, yh, precision=hp)
                         + bh[None, :, None, None])
    a_w = jax.nn.sigmoid(jnp.einsum('om,nmhw->nohw', ww, yw, precision=hp)
                         + bw[None, :, None, None])
    return x * a_w * a_h


if __name__ == "__main__":
    key = jax.random.PRNGKey(0)
    kx, kp = jax.random.split(key)

    N, C, H, W = 2, 4, 16, 16   # inp == oup == C
    x = jax.random.normal(kx, (N, C, H, W), jnp.float32)
    params = init_params(kp, inp=C, oup=C, reduction=32)

    out = jax.block_until_ready(coord_att(x, params))

    ref = coord_att_ref(x, params)
    assert out.shape == (N, C, H, W)
    max_err = float(jnp.max(jnp.abs(out - ref)))
    assert jnp.allclose(out, ref, atol=1e-4, rtol=1e-4), \
        f"mismatch vs reference (max abs err {max_err})"

    print("KERNEL_OK")
</pallas_src>

<mosaic_0001>
module attributes {stable_mosaic.version = 11 : i64} {
  func.func @_coordatt_kernel(%arg0: i32, %arg1: memref<1x4x256xf32, #tpu.memory_space<vmem>>, %arg2: memref<8x4xf32, #tpu.memory_space<vmem>>, %arg3: memref<8x1xf32, #tpu.memory_space<vmem>>, %arg4: memref<8x1xf32, #tpu.memory_space<vmem>>, %arg5: memref<4x8xf32, #tpu.memory_space<vmem>>, %arg6: memref<4x1xf32, #tpu.memory_space<vmem>>, %arg7: memref<4x8xf32, #tpu.memory_space<vmem>>, %arg8: memref<4x1xf32, #tpu.memory_space<vmem>>, %arg9: memref<256x32xf32, #tpu.memory_space<vmem>>, %arg10: memref<32x256xf32, #tpu.memory_space<vmem>>, %arg11: memref<32x256xf32, #tpu.memory_space<vmem>>, %arg12: memref<1x4x256xf32, #tpu.memory_space<vmem>>) attributes {dimension_semantics = [#tpu.dimension_semantics<parallel>], iteration_bounds = array<i64: 2>, scalar_prefetch = 0 : i64, scratch_operands = 0 : i64, tpu.core_type = #tpu.core_type<tc>, window_params = [{transform_indices = @transform_0, window_bounds = array<i64: 1, 4, 256>}, {pipeline_mode = #tpu.pipeline_mode<synchronous>, transform_indices = @transform_1, window_bounds = array<i64: 8, 4>}, {pipeline_mode = #tpu.pipeline_mode<synchronous>, transform_indices = @transform_2, window_bounds = array<i64: 8, 1>}, {pipeline_mode = #tpu.pipeline_mode<synchronous>, transform_indices = @transform_3, window_bounds = array<i64: 8, 1>}, {pipeline_mode = #tpu.pipeline_mode<synchronous>, transform_indices = @transform_4, window_bounds = array<i64: 4, 8>}, {pipeline_mode = #tpu.pipeline_mode<synchronous>, transform_indices = @transform_5, window_bounds = array<i64: 4, 1>}, {pipeline_mode = #tpu.pipeline_mode<synchronous>, transform_indices = @transform_6, window_bounds = array<i64: 4, 8>}, {pipeline_mode = #tpu.pipeline_mode<synchronous>, transform_indices = @transform_7, window_bounds = array<i64: 4, 1>}, {pipeline_mode = #tpu.pipeline_mode<synchronous>, transform_indices = @transform_8, window_bounds = array<i64: 256, 32>}, {pipeline_mode = #tpu.pipeline_mode<synchronous>, transform_indices = @transform_9, window_bounds = array<i64: 32, 256>}, {pipeline_mode = #tpu.pipeline_mode<synchronous>, transform_indices = @transform_10, window_bounds = array<i64: 32, 256>}, {transform_indices = @transform_11, window_bounds = array<i64: 1, 4, 256>}]} {
    %c0 = arith.constant 0 : index
    %c0_0 = arith.constant 0 : index
    %0 = vector.load %arg2[%c0, %c0_0] : memref<8x4xf32, #tpu.memory_space<vmem>>, vector<8x4xf32>
    %c0_1 = arith.constant 0 : index
    %c0_2 = arith.constant 0 : index
    %1 = vector.load %arg3[%c0_1, %c0_2] : memref<8x1xf32, #tpu.memory_space<vmem>>, vector<8x1xf32>
    %c0_3 = arith.constant 0 : index
    %c0_4 = arith.constant 0 : index
    %2 = vector.load %arg4[%c0_3, %c0_4] : memref<8x1xf32, #tpu.memory_space<vmem>>, vector<8x1xf32>
    %c0_5 = arith.constant 0 : index
    %c0_6 = arith.constant 0 : index
    %3 = vector.load %arg5[%c0_5, %c0_6] : memref<4x8xf32, #tpu.memory_space<vmem>>, vector<4x8xf32>
    %c0_7 = arith.constant 0 : index
    %c0_8 = arith.constant 0 : index
    %4 = vector.load %arg6[%c0_7, %c0_8] : memref<4x1xf32, #tpu.memory_space<vmem>>, vector<4x1xf32>
    %c0_9 = arith.constant 0 : index
    %c0_10 = arith.constant 0 : index
    %5 = vector.load %arg7[%c0_9, %c0_10] : memref<4x8xf32, #tpu.memory_space<vmem>>, vector<4x8xf32>
    %c0_11 = arith.constant 0 : index
    %c0_12 = arith.constant 0 : index
    %6 = vector.load %arg8[%c0_11, %c0_12] : memref<4x1xf32, #tpu.memory_space<vmem>>, vector<4x1xf32>
    %c0_13 = arith.constant 0 : index
    %c0_14 = arith.constant 0 : index
    %7 = vector.load %arg9[%c0_13, %c0_14] : memref<256x32xf32, #tpu.memory_space<vmem>>, vector<256x32xf32>
    %c0_15 = arith.constant 0 : index
    %c0_16 = arith.constant 0 : index
    %8 = vector.load %arg10[%c0_15, %c0_16] : memref<32x256xf32, #tpu.memory_space<vmem>>, vector<32x256xf32>
    %c0_17 = arith.constant 0 : index
    %c0_18 = arith.constant 0 : index
    %9 = vector.load %arg11[%c0_17, %c0_18] : memref<32x256xf32, #tpu.memory_space<vmem>>, vector<32x256xf32>
    %c0_19 = arith.constant 0 : index
    %c0_20 = arith.constant 0 : index
    %c0_21 = arith.constant 0 : index
    %10 = vector.load %arg1[%c0_19, %c0_20, %c0_21] : memref<1x4x256xf32, #tpu.memory_space<vmem>>, vector<1x4x256xf32>
    %11 = vector.shape_cast %10 : vector<1x4x256xf32> to vector<4x256xf32>
    %cst = arith.constant dense<0.000000e+00> : vector<4x32xf32>
    %12 = tpu.matmul %11, %7, %cst {dimension_numbers = #tpu.dot_dimension_numbers<[1], [0], [0], [1], [0, 0, 1, 1], [], []>, precision = #tpu.contract_precision<fp32>} : vector<4x256xf32>, vector<256x32xf32>, vector<4x32xf32> -> vector<4x32xf32>
    %cst_22 = arith.constant dense<0.000000e+00> : vector<8x32xf32>
    %13 = tpu.matmul %0, %12, %cst_22 {dimension_numbers = #tpu.dot_dimension_numbers<[1], [0], [0], [1], [0, 0, 1, 1], [], []>, precision = #tpu.contract_precision<fp32>} : vector<8x4xf32>, vector<4x32xf32>, vector<8x32xf32> -> vector<8x32xf32>
    %14 = vector.broadcast %1 : vector<8x1xf32> to vector<8x32xf32>
    %15 = arith.mulf %13, %14 : vector<8x32xf32>
    %16 = vector.broadcast %2 : vector<8x1xf32> to vector<8x32xf32>
    %17 = arith.addf %15, %16 : vector<8x32xf32>
    %cst_23 = arith.constant 3.000000e+00 : f32
    %18 = vector.broadcast %cst_23 : f32 to vector<8x32xf32>
    %19 = arith.addf %17, %18 : vector<8x32xf32>
    %cst_24 = arith.constant 0.000000e+00 : f32
    %cst_25 = arith.constant 6.000000e+00 : f32
    %20 = vector.broadcast %cst_24 : f32 to vector<8x32xf32>
    %21 = arith.maximumf %20, %19 : vector<8x32xf32>
    %22 = vector.broadcast %cst_25 : f32 to vector<8x32xf32>
    %23 = arith.minimumf %22, %21 : vector<8x32xf32>
    %cst_26 = arith.constant 0.166666672 : f32
    %24 = vector.broadcast %cst_26 : f32 to vector<8x32xf32>
    %25 = arith.mulf %23, %24 : vector<8x32xf32>
    %26 = arith.mulf %17, %25 : vector<8x32xf32>
    %cst_27 = arith.constant dense<0.000000e+00> : vector<4x32xf32>
    %27 = tpu.matmul %3, %26, %cst_27 {dimension_numbers = #tpu.dot_dimension_numbers<[1], [0], [0], [1], [0, 0, 1, 1], [], []>, precision = #tpu.contract_precision<fp32>} : vector<4x8xf32>, vector<8x32xf32>, vector<4x32xf32> -> vector<4x32xf32>
    %28 = vector.broadcast %4 : vector<4x1xf32> to vector<4x32xf32>
    %29 = arith.addf %27, %28 : vector<4x32xf32>
    %30 = arith.negf %29 : vector<4x32xf32>
    %31 = math.exp %30 : vector<4x32xf32>
    %cst_28 = arith.constant 1.000000e+00 : f32
    %32 = vector.broadcast %cst_28 : f32 to vector<4x32xf32>
    %33 = arith.addf %32, %31 : vector<4x32xf32>
    %34 = arith.divf %32, %33 : vector<4x32xf32>
    %cst_29 = arith.constant dense<0.000000e+00> : vector<4x32xf32>
    %35 = tpu.matmul %5, %26, %cst_29 {dimension_numbers = #tpu.dot_dimension_numbers<[1], [0], [0], [1], [0, 0, 1, 1], [], []>, precision = #tpu.contract_precision<fp32>} : vector<4x8xf32>, vector<8x32xf32>, vector<4x32xf32> -> vector<4x32xf32>
    %36 = vector.broadcast %6 : vector<4x1xf32> to vector<4x32xf32>
    %37 = arith.addf %35, %36 : vector<4x32xf32>
    %38 = arith.negf %37 : vector<4x32xf32>
    %39 = math.exp %38 : vector<4x32xf32>
    %cst_30 = arith.constant 1.000000e+00 : f32
    %40 = vector.broadcast %cst_30 : f32 to vector<4x32xf32>
    %41 = arith.addf %40, %39 : vector<4x32xf32>
    %42 = arith.divf %40, %41 : vector<4x32xf32>
    %cst_31 = arith.constant dense<0.000000e+00> : vector<4x256xf32>
    %43 = tpu.matmul %34, %8, %cst_31 {dimension_numbers = #tpu.dot_dimension_numbers<[1], [0], [0], [1], [0, 0, 1, 1], [], []>, precision = #tpu.contract_precision<fp32>} : vector<4x32xf32>, vector<32x256xf32>, vector<4x256xf32> -> vector<4x256xf32>
    %cst_32 = arith.constant dense<0.000000e+00> : vector<4x256xf32>
    %44 = tpu.matmul %42, %9, %cst_32 {dimension_numbers = #tpu.dot_dimension_numbers<[1], [0], [0], [1], [0, 0, 1, 1], [], []>, precision = #tpu.contract_precision<fp32>} : vector<4x32xf32>, vector<32x256xf32>, vector<4x256xf32> -> vector<4x256xf32>
    %45 = arith.mulf %11, %43 : vector<4x256xf32>
    %46 = arith.mulf %45, %44 : vector<4x256xf32>
    %c0_33 = arith.constant 0 : index
    %c0_34 = arith.constant 0 : index
    %c0_35 = arith.constant 0 : index
    %47 = vector.load %arg12[%c0_33, %c0_34, %c0_35] : memref<1x4x256xf32, #tpu.memory_space<vmem>>, vector<1x4x256xf32>
    %48 = vector.shape_cast %47 : vector<1x4x256xf32> to vector<4x256xf32>
    %49 = vector.shape_cast %46 : vector<4x256xf32> to vector<1x4x256xf32>
    tpu.vector_store %arg12[%c0_33, %c0_34, %c0_35], %49 {strides = array<i32>} : memref<1x4x256xf32, #tpu.memory_space<vmem>>, vector<1x4x256xf32>,
    return
  }
  func.func @transform_0(%arg0: i32) -> (i32, i32, i32) {
    %c0_i32 = arith.constant 0 : i32
    %c0_i32_0 = arith.constant 0 : i32
    %c0_i32_1 = arith.constant 0 : i32
    return %arg0, %c0_i32, %c0_i32_0 : i32, i32, i32
  }
  func.func @transform_1(%arg0: i32) -> (i32, i32) {
    %c0_i32 = arith.constant 0 : i32
    %c0_i32_0 = arith.constant 0 : i32
    %c0_i32_1 = arith.constant 0 : i32
    return %c0_i32, %c0_i32_0 : i32, i32
  }
  func.func @transform_2(%arg0: i32) -> (i32, i32) {
    %c0_i32 = arith.constant 0 : i32
    %c0_i32_0 = arith.constant 0 : i32
    %c0_i32_1 = arith.constant 0 : i32
    return %c0_i32, %c0_i32_0 : i32, i32
  }
  func.func @transform_3(%arg0: i32) -> (i32, i32) {
    %c0_i32 = arith.constant 0 : i32
    %c0_i32_0 = arith.constant 0 : i32
    %c0_i32_1 = arith.constant 0 : i32
    return %c0_i32, %c0_i32_0 : i32, i32
  }
  func.func @transform_4(%arg0: i32) -> (i32, i32) {
    %c0_i32 = arith.constant 0 : i32
    %c0_i32_0 = arith.constant 0 : i32
    %c0_i32_1 = arith.constant 0 : i32
    return %c0_i32, %c0_i32_0 : i32, i32
  }
  func.func @transform_5(%arg0: i32) -> (i32, i32) {
    %c0_i32 = arith.constant 0 : i32
    %c0_i32_0 = arith.constant 0 : i32
    %c0_i32_1 = arith.constant 0 : i32
    return %c0_i32, %c0_i32_0 : i32, i32
  }
  func.func @transform_6(%arg0: i32) -> (i32, i32) {
    %c0_i32 = arith.constant 0 : i32
    %c0_i32_0 = arith.constant 0 : i32
    %c0_i32_1 = arith.constant 0 : i32
    return %c0_i32, %c0_i32_0 : i32, i32
  }
  func.func @transform_7(%arg0: i32) -> (i32, i32) {
    %c0_i32 = arith.constant 0 : i32
    %c0_i32_0 = arith.constant 0 : i32
    %c0_i32_1 = arith.constant 0 : i32
    return %c0_i32, %c0_i32_0 : i32, i32
  }
  func.func @transform_8(%arg0: i32) -> (i32, i32) {
    %c0_i32 = arith.constant 0 : i32
    %c0_i32_0 = arith.constant 0 : i32
    %c0_i32_1 = arith.constant 0 : i32
    return %c0_i32, %c0_i32_0 : i32, i32
  }
  func.func @transform_9(%arg0: i32) -> (i32, i32) {
    %c0_i32 = arith.constant 0 : i32
    %c0_i32_0 = arith.constant 0 : i32
    %c0_i32_1 = arith.constant 0 : i32
    return %c0_i32, %c0_i32_0 : i32, i32
  }
  func.func @transform_10(%arg0: i32) -> (i32, i32) {
    %c0_i32 = arith.constant 0 : i32
    %c0_i32_0 = arith.constant 0 : i32
    %c0_i32_1 = arith.constant 0 : i32
    return %c0_i32, %c0_i32_0 : i32, i32
  }
  func.func @transform_11(%arg0: i32) -> (i32, i32, i32) {
    %c0_i32 = arith.constant 0 : i32
    %c0_i32_0 = arith.constant 0 : i32
    %c0_i32_1 = arith.constant 0 : i32
    return %arg0, %c0_i32, %c0_i32_0 : i32, i32, i32
  }
}

</mosaic_0001>

<bundles_post_ra>
// kernel: tpu_custom_call.1
= control target key start
LH: loop header
LB: loop body
LE: loop exit
PB: predicated region body
PF: predicated region fallthrough
CT: control target
= control target key end

     0   :  { %s5598_s0 = inlined_call_operand.vmem [shape: f32[2,4,256], index: 0, kind: input, shape index: {}]   ;;  %s5599_s1 = inlined_call_operand.vmem [shape: f32[8,4], index: 1, kind: input, shape index: {}]   ;;  %s5600_s2 = inlined_call_operand.vmem [shape: f32[8,1], index: 2, kind: input, shape index: {}]   ;;  %s5601_s3 = inlined_call_operand.vmem [shape: f32[8,1], index: 3, kind: input, shape index: {}]   ;;  %s5602_s4 = inlined_call_operand.vmem [shape: f32[4,8], index: 4, kind: input, shape index: {}]   ;;  %s5603_s5 = inlined_call_operand.vmem [shape: f32[4,1], index: 5, kind: input, shape index: {}]   ;;  %s5604_s6 = inlined_call_operand.vmem [shape: f32[4,8], index: 6, kind: input, shape index: {}]   ;;  %s5605_s7 = inlined_call_operand.vmem [shape: f32[4,1], index: 7, kind: input, shape index: {}]   ;;  %s5606_s8 = inlined_call_operand.vmem [shape: f32[256,32], index: 8, kind: input, shape index: {}]   ;;  %s5607_s9 = inlined_call_operand.vmem [shape: f32[32,256], index: 9, kind: input, shape index: {}]   ;;  %s5608_s10 = inlined_call_operand.vmem [shape: f32[32,256], index: 10, kind: input, shape index: {}]   ;;  %s5609_s11 = inlined_call_operand.hbm [shape: f32[2,4,256], index: 11, kind: output, shape index: {}]  }
   0x1   :  { %5681 = sst [smem:[#allocation29_spill]] %s5598_s0 }
   0x2   :  { %5682 = sst [smem:[#allocation30_spill]] %s5599_s1 }
   0x3   :  { %16 = vsyncpa [#allocation3], 0 }
   0x4   :  { %18 = vsyncpa [#allocation3 + $0x1], 0  ;;  %s4408_s17 = smov 0   ;;  %s4410_s18 = smov 0  }
   0x5   :  { %s4412_s19 = smov 0   ;;  %s4414_s20 = smov 0  }
   0x6 LB: > { %s4429_s21 = sadd.s32 4294967295, %s4342_s20   ;;  %s3876_s22 = sadd.s32 4294967294, %s4342_s20   ;;  %s4342_s20 = sphi %s4414_s20, %s5782_s20   ;;  %s4338_s19 = sphi %s4412_s19, %s5781_s19   ;;  %s4334_s18 = sphi %s4410_s18, %s5780_s18   ;;  %s4330_s17 = sphi %s4408_s17, %s5779_s17  }
   0x7   : > { %s4433_s23 = sadd.s32 1, %s4342_s20   ;;  %s267_s24 = sadd.s32 1, %s4338_s19 }
   0x8   : > { %s264_s25 = ssub.s32 %s4342_s20, %s4433_s23  ;;  %p277_p0 = scmp.ne.s32.totalorder %s4338_s19, %s4334_s18 }
   0x9   : > { %p265_p1 = scmp.eq.s32.totalorder %s264_s25, 0  ;;  %p278_p2 = scmp.eq.s32.totalorder %s4429_s21, 1 }
   0xa   : > { %p283_p3 = scmp.ne.s32.totalorder %s4334_s18, %s4330_s17  ;;  %p284_p4 = scmp.eq.s32.totalorder %s3876_s22, 1 }
   0xb   : > { %s4444_s26 = scalar_select %p265_p1, %s4338_s19, %s267_s24  }
   0xc   : > { %p4446_p5 = por %p278_p2, %p277_p0  ;;  %p4450_p6 = por %p284_p4, %p283_p3 }
   0xd   : > { %p3879_p7 = scmp.ge.s32.totalorder %s4342_s20, 1  ;;  %p340_p8 = scmp.lt.s32.totalorder %s4342_s20, 3 }
   0xf   : > { %p341_p9 = pnand %p3879_p7, %p340_p8 }
  0x11   : > { %344 = sbr.rel (%p341_p9) target bundleno = 1090 (0x442), region = 64 }
  0x16   : > { %v423_v0 = vld [vmem:[%s5606_s8 + $0xf8] sm:$0xff]  ;;  %v422_v2 = vld [vmem:[%s5606_s8 + $0xf0] sm:$0xff]  ;;  %v421_v7 = vld [vmem:[%s5606_s8 + $0xe8] sm:$0xff]  ;;  %p380_p10 = scmp.lt.s32.totalorder %s4429_s21, 1  ;;  %s5704_s0 = sld [smem:[#allocation29_spill]]  ;;  %vm4345_vm0 = vmmov 0  }
  0x17   : > { %v407_v1 = vld [vmem:[%s5606_s8 + $0x78] sm:$0xff]  ;;  %v4465_v3 = vand.u32 4294901760, %v423_v0  ;;  %v4469_v5 = vand.u32 4294901760, %v422_v2  ;;  %v406_v6 = vld [vmem:[%s5606_s8 + $0x70] sm:$0xff]  ;;  %v405_v8 = vld [vmem:[%s5606_s8 + $0x68] sm:$0xff]  ;;  %v4482_v10 = vand.u32 4294901760, %v421_v7 }
  0x18   : > { %v4467_v4 = vand.u32 4294901760, %v407_v1  ;;  %v4480_v9 = vand.u32 4294901760, %v406_v6  ;;  %v4484_v11 = vand.u32 4294901760, %v405_v8  ;;  %v420_v12 = vld [vmem:[%s5606_s8 + $0xe0] sm:$0xff]  ;;  %v419_v14 = vld [vmem:[%s5606_s8 + $0xd8] sm:$0xff]  ;;  %v4513_v20 = vld [vmem:[%s5606_s8 + $0xd0] sm:$0xff] }
  0x19   : > { %v404_v13 = vld [vmem:[%s5606_s8 + $0x60] sm:$0xff]  ;;  %3892 = vmatprep.subr.mxu0 %v4465_v3  ;;  %v4496_v15 = vand.u32 4294901760, %v420_v12  ;;  %v4500_v17 = vand.u32 4294901760, %v419_v14  ;;  %v4503_v18 = vsub.f32 %v423_v0, %v4465_v3  ;;  %v4508_v19 = vld [vmem:[%s5606_s8 + $0x58] sm:$0xff]  ;;  %v4518_v21 = vld [vmem:[%s5606_s8 + $0x50] sm:$0xff]  ;;  %v4528_v24 = vand.u32 4294901760, %v4513_v20 }
  0x1a   : > { %v4498_v16 = vand.u32 4294901760, %v404_v13  ;;  %3893 = vmatpush3.msra.mxu0 %v4467_v4  ;;  %v4522_v22 = vand.u32 4294901760, %v4508_v19  ;;  %v4525_v23 = vsub.f32 %v407_v1, %v4467_v4  ;;  %v4531_v25 = vsub.f32 %v422_v2, %v4469_v5  ;;  %v4536_v26 = vld [vmem:[%s5606_s8 + $0xc8] sm:$0xff]  ;;  %v4546_v28 = vld [vmem:[%s5606_s8 + $0xc0] sm:$0xff]  ;;  %v4598_v46 = vld [vmem:[%s5606_s8 + $0xb8] sm:$0xff]  ;;  %s4736_s29 = scalar_select %p380_p10, %s4429_s21, 1 }
  0x1b   : > { %v4541_v27 = vld [vmem:[%s5606_s8 + $0x48] sm:$0xff]  ;;  %3894 = vmatprep.subr.mxu0 %v4469_v5  ;;  %v5623_v29 = vand.u32 4294901760, %v4503_v18  ;;  %v4551_v30 = vand.u32 4294901760, %v4518_v21  ;;  %v4554_v31 = vsub.f32 %v406_v6, %v4480_v9  ;;  %v4557_v32 = vand.u32 4294901760, %v4536_v26  ;;  %v4571_v37 = vld [vmem:[%s5606_s8 + $0x40] sm:$0xff]  ;;  %v4611_v51 = vld [vmem:[%s5606_s8 + $0x38] sm:$0xff] }
  0x1c   : > { %3895 = vmatpush3.msra.mxu0 %v4480_v9  ;;  %v5622_v33 = vand.u32 4294901760, %v4525_v23  ;;  %v5620_v34 = vand.u32 4294901760, %v4531_v25  ;;  %v4563_v35 = vsub.f32 %v421_v7, %v4482_v10  ;;  %v4566_v36 = vand.u32 4294901760, %v4541_v27  ;;  %v4621_v56 = vld [vmem:[%s5606_s8 + $0xb0] sm:$0xff]  ;;  %v4651_v2 = vld [vmem:[%s5606_s8 + $0xa8] sm:$0xff]  ;;  %s3890_s25 = sshll.u32 %s4736_s29, 3 }
  0x1d   : > { %5685 = vst [vmem:[#allocation5_spill] sm:$0xff] %v4551_v30  ;;  %5686 = vst [vmem:[#allocation6_spill] sm:$0xff] %v4557_v32  ;;  %3896 = vmatprep.subr.mxu0 %v4482_v10  ;;  %v672_v38 = vsub.f32 %v4503_v18, %v5623_v29  ;;  %v5619_v39 = vand.u32 4294901760, %v4554_v31  ;;  %v4579_v40 = vsub.f32 %v405_v8, %v4484_v11  ;;  %v4582_v41 = vand.u32 4294901760, %v4546_v28  ;;  %v4636_v61 = vld [vmem:[%s5606_s8 + $0x30] sm:$0xff]  ;;  %s4841_s16 = scalar_lea.vmem %s5704_s0, %s3890_s25  ;;  %s5778_s1 = sld [smem:[#allocation30_spill]] }
  0x1e   : > { %5687 = vst [vmem:[#allocation7_spill] sm:$0xff] %v4566_v36  ;;  %3897 = vmatpush3.msra.mxu0 %v4484_v11  ;;  %v560_v42 = vsub.f32 %v4525_v23, %v5622_v33  ;;  %v679_v43 = vsub.f32 %v4531_v25, %v5620_v34  ;;  %v5617_v44 = vand.u32 4294901760, %v4563_v35  ;;  %v4593_v45 = vsub.f32 %v420_v12, %v4496_v15  ;;  %v4793_v33 = vld [vmem:[%s5606_s8 + $0x88] sm:$0xff]  ;;  %s377_s29 = sand.u32 1, %s4334_s18   ;;  %s3891_s12 = sshll.u32 %s4429_s21, 7 }
  0x1f   : > { %5688 = vst [vmem:[#allocation8_spill] sm:$0xff] %v4582_v41  ;;  %3898 = vmatprep.subr.mxu0 %v4496_v15  ;;  %v673_v47 = vand.u32 4294901760, %v672_v38  ;;  %v567_v48 = vsub.f32 %v4554_v31, %v5619_v39  ;;  %v5615_v49 = vand.u32 4294901760, %v4579_v40  ;;  %v4606_v50 = vand.u32 4294901760, %v4571_v37  ;;  %s3880_s30 = sshll.u32 %s377_s29, 3  ;;  %s3815_s24 = scalar_lea.hbm %s5609_s11, %s3891_s12 }
  0x20   : > { %3899 = vmatpush3.msra.mxu0 %v4498_v16  ;;  %v561_v52 = vand.u32 4294901760, %v560_v42  ;;  %v680_v53 = vand.u32 4294901760, %v679_v43  ;;  %v686_v54 = vsub.f32 %v4563_v35, %v5617_v44  ;;  %v5614_v55 = vand.u32 4294901760, %v4593_v45  ;;  %v4766_v44 = vld [vmem:[%s5606_s8 + $0x90] sm:$0xff]  ;;  %s379_s13 = scalar_lea.vmem [#allocation2], %s3880_s30  ;;  %s3803_s25 = scalar_lea.sflag [#allocation3], %s377_s29 }
  0x21   : > { %5689 = vst [vmem:[#allocation9_spill] sm:$0xff] %v4606_v50  ;;  %3900 = vmatprep.subr.mxu0 %v4500_v17  ;;  %3927 = vmatprep.subr.mxu1 %v673_v47  ;;  %v568_v57 = vand.u32 4294901760, %v567_v48  ;;  %v574_v58 = vsub.f32 %v4579_v40, %v5615_v49  ;;  %v4628_v59 = vsub.f32 %v404_v13, %v4498_v16  ;;  %v4631_v60 = vand.u32 4294901760, %v4598_v46  ;;  %v4665_v13 = vld [vmem:[%s5606_s8 + $0x28] sm:$0xff]  ;;  %v4750_v49 = vld [vmem:[%s5606_s8 + $0x18] sm:$0xff]  ;;  %s3817_s14 = sshll.u32 %s379_s13, 4  ;;  %s3818_s14 = int_to_ptr.vmem [resolvable:$true] %s3817_s14 }
  0x22   : > { %3901 = vmatpush3.msra.mxu0 %v4522_v22  ;;  %3928 = vmatpush3.msra.mxu1 %v561_v52  ;;  %v687_v62 = vand.u32 4294901760, %v686_v54  ;;  %v693_v63 = vsub.f32 %v4593_v45, %v5614_v55  ;;  %v4643_v0 = vsub.f32 %v419_v14, %v4500_v17  ;;  %v4646_v1 = vand.u32 4294901760, %v4611_v51  ;;  %v4692_v52 = vld [vmem:[%s5606_s8 + $0xa0] sm:$0xff]  ;;  %s4282_s0 = scalar_lea.vmem %s3818_s14, 128 }
  0x23   : > { %5690 = vst [vmem:[#allocation10_spill] sm:$0xff] %v4631_v60  ;;  %3902 = vmatprep.subr.mxu0 %v4528_v24  ;;  %3929 = vmatprep.subr.mxu1 %v680_v53  ;;  %v575_v6 = vand.u32 4294901760, %v574_v58  ;;  %v5613_v7 = vand.u32 4294901760, %v4628_v59  ;;  %v4657_v8 = vsub.f32 %v4508_v19, %v4522_v22  ;;  %v4660_v12 = vand.u32 4294901760, %v4621_v56  ;;  %p4283_p11 = scmp.ne.s32.totalorder %s3818_s14, %s4282_s0 }
  0x24   : > { %5691 = vst [vmem:[#allocation11_spill] sm:$0xff] %v4646_v1  ;;  %3903 = vmatpush3.msra.mxu0 %v4551_v30  ;;  %3930 = vmatpush3.msra.mxu1 %v568_v57  ;;  %v694_v14 = vand.u32 4294901760, %v693_v63  ;;  %v5610_v38 = vand.u32 4294901760, %v4643_v0  ;;  %v4671_v42 = vsub.f32 %v4513_v20, %v4528_v24  ;;  %v4674_v19 = vand.u32 4294901760, %v4636_v61 }
  0x25   : > { %5692 = vst [vmem:[#allocation12_spill] sm:$0xff] %v4660_v12  ;;  %3904 = vmatprep.subr.mxu0 %v4557_v32  ;;  %3931 = vmatprep.subr.mxu1 %v687_v62  ;;  %v581_v43 = vsub.f32 %v4628_v59, %v5613_v7  ;;  %v5611_v47 = vand.u32 4294901760, %v4657_v8  ;;  %v4684_v48 = vsub.f32 %v4518_v21, %v4551_v30  ;;  %v4687_v20 = vand.u32 4294901760, %v4651_v2  ;;  %p4284_p12 = pnand %p4283_p11, %p4446_p5 }
  0x26   : > { %5693 = vst [vmem:[#allocation13_spill] sm:$0xff] %v4674_v19  ;;  %3905 = vmatpush3.msra.mxu0 %v4566_v36  ;;  %3932 = vmatpush3.msra.mxu1 %v575_v6  ;;  %v700_v53 = vsub.f32 %v4643_v0, %v5610_v38  ;;  %v5612_v54 = vand.u32 4294901760, %v4671_v42  ;;  %v4701_v21 = vsub.f32 %v4536_v26, %v4557_v32  ;;  %v4704_v57 = vand.u32 4294901760, %v4665_v13  ;;  %v4718_v26 = vld [vmem:[%s5606_s8 + $0x20] sm:$0xff] }
  0x27   : > { %5694 = vst [vmem:[#allocation14_spill] sm:$0xff] %v4687_v20  ;;  %3906 = vmatprep.subr.mxu0 %v4582_v41  ;;  %3933 = vmatprep.subr.mxu1 %v694_v14  ;;  %v582_v58 = vand.u32 4294901760, %v581_v43  ;;  %v588_v62 = vsub.f32 %v4657_v8, %v5611_v47  ;;  %v5616_v63 = vand.u32 4294901760, %v4684_v48  ;;  %v4713_v6 = vsub.f32 %v4541_v27, %v4566_v36  ;;  %v4731_v27 = vld [vmem:[%s5606_s8 + $0x98] sm:$0xff]  ;;  %p4285_p13 = pneg %p4284_p12 }
  0x28   : > { %5695 = vst [vmem:[#allocation15_spill] sm:$0xff] %v4704_v57  ;;  %3907 = vmatpush3.msra.mxu0 %v4606_v50  ;;  %v701_v38 = vand.u32 4294901760, %v700_v53  ;;  %v707_v14 = vsub.f32 %v4671_v42, %v5612_v54  ;;  %v5618_v43 = vand.u32 4294901760, %v4701_v21  ;;  %v4726_v47 = vand.u32 4294901760, %v4692_v52 }
  0x29   : > { %3934 = vmatpush3.msra.mxu1 %v582_v58  ;;  %3908 = vmatprep.subr.mxu0 %v4631_v60  ;;  %v589_v53 = vand.u32 4294901760, %v588_v62  ;;  %v595_v54 = vsub.f32 %v4684_v48, %v5616_v63  ;;  %v5621_v7 = vand.u32 4294901760, %v4713_v6  ;;  %v4745_v55 = vsub.f32 %v4546_v28, %v4582_v41 }
  0x2a   : > { %5696 = vst [vmem:[#allocation16_spill] sm:$0xff] %v4726_v47  ;;  %3935 = vmatprep.subr.mxu1 %v701_v38  ;;  %3909 = vmatpush3.msra.mxu0 %v4646_v1  ;;  %v708_v58 = vand.u32 4294901760, %v707_v14  ;;  %v714_v62 = vsub.f32 %v4701_v21, %v5618_v43  ;;  %v4757_v63 = vand.u32 4294901760, %v4718_v26  ;;  %v4761_v28 = vsub.f32 %v4571_v37, %v4606_v50  ;;  %v4779_v37 = vld [vmem:[%s5606_s8 + $0x10] sm:$0xff] }
  0x2b   : > { %3936 = vmatpush3.msra.mxu1 %v589_v53  ;;  %3910 = vmatprep.subr.mxu0 %v4660_v12  ;;  %v596_v38 = vand.u32 4294901760, %v595_v54  ;;  %v602_v14 = vsub.f32 %v4713_v6, %v5621_v7  ;;  %v5626_v43 = vand.u32 4294901760, %v4745_v55  ;;  %v4774_v39 = vand.u32 4294901760, %v4731_v27 }
  0x2c   : > { %5697 = vst [vmem:[#allocation17_spill] sm:$0xff] %v4757_v63  ;;  %3937 = vmatprep.subr.mxu1 %v708_v58  ;;  %3911 = vmatpush3.msra.mxu0 %v4674_v19  ;;  %v715_v53 = vand.u32 4294901760, %v714_v62  ;;  %v5627_v54 = vand.u32 4294901760, %v4761_v28  ;;  %v4785_v34 = vsub.f32 %v4598_v46, %v4631_v60  ;;  %v4788_v7 = vand.u32 4294901760, %v4750_v49 }
  0x2d   : > { %5698 = vst [vmem:[#allocation18_spill] sm:$0xff] %v4774_v39  ;;  %3938 = vmatpush3.msra.mxu1 %v596_v38  ;;  %3912 = vmatprep.subr.mxu0 %v4687_v20  ;;  %v603_v58 = vand.u32 4294901760, %v602_v14  ;;  %v721_v62 = vsub.f32 %v4745_v55, %v5626_v43  ;;  %v4802_v46 = vsub.f32 %v4611_v51, %v4646_v1  ;;  %v4805_v29 = vand.u32 4294901760, %v4766_v44  ;;  %v4822_v51 = vld [vmem:[%s5606_s8 + $0x8] sm:$0xff] }
  0x2e   : > { %5699 = vst [vmem:[#allocation19_spill] sm:$0xff] %v4788_v7  ;;  %3939 = vmatprep.subr.mxu1 %v715_v53  ;;  %3913 = vmatpush3.msra.mxu0 %v4704_v57  ;;  %v609_v38 = vsub.f32 %v4761_v28, %v5627_v54  ;;  %v4814_v60 = vsub.f32 %v4621_v56, %v4660_v12  ;;  %v4817_v43 = vand.u32 4294901760, %v4779_v37  ;;  %v4831_v56 = vand.u32 4294901760, %v4793_v33  ;;  %v4836_v12 = vld [vmem:[%s5606_s8 + $0x80] sm:$0xff] }
  0x2f   : > { %5700 = vst [vmem:[#allocation20_spill] sm:$0xff] %v4805_v29  ;;  %3940 = vmatpush3.msra.mxu1 %v603_v58  ;;  %3914 = vmatprep.subr.mxu0 %v4726_v47  ;;  %v722_v53 = vand.u32 4294901760, %v721_v62  ;;  %v4828_v14 = vsub.f32 %v4636_v61, %v4674_v19  ;;  %v5705_v62 = vand.u32 4294901760, %v4785_v34  ;;  %v4850_v19 = vsub.f32 %v4651_v2, %v4687_v20  ;;  %v4867_v2 = vld [vmem:[%s5606_s8] sm:$0xff] }
  0x30   : > { %5701 = vst [vmem:[#allocation21_spill] sm:$0xff] %v4817_v43  ;;  %5703 = vst [vmem:[#allocation23_spill] sm:$0xff] %v4831_v56  ;;  %3915 = vmatpush3.msra.mxu0 %v4757_v63  ;;  %v610_v58 = vand.u32 4294901760, %v609_v38  ;;  %v5646_v54 = vand.u32 4294901760, %v4814_v60  ;;  %v5707_v1 = vand.u32 4294901760, %v4802_v46  ;;  %v4858_v41 = vand.u32 4294901760, %v4822_v51 }
  0x31   : > { %5702 = vst [vmem:[#allocation22_spill] sm:$0xff] %v4828_v14  ;;  %v728_v61 = vsub.f32 %v4785_v34, %v5705_v62  ;;  %5706 = vst [vmem:[#allocation24_spill] sm:$0xff] %v4850_v19  ;;  %3941 = vmatprep.subr.mxu1 %v722_v53  ;;  %3916 = vmatprep.subr.mxu0 %v4774_v39  ;;  %v4862_v62 = vsub.f32 %v4665_v13, %v4704_v57  ;;  %v5651_v38 = vand.u32 4294901760, %v4850_v19  ;;  %v440_v13 = vld [vmem:[%s4841_s16] sm:$0xff]  ;;  %vm1306_vm1 = vcmask 31744  }
  0x32   : > { %v616_v50 = vsub.f32 %v4802_v46, %v5707_v1  ;;  %5708 = vst [vmem:[#allocation25_spill] sm:$0xff] %v4858_v41  ;;  %3942 = vmatpush3.msra.mxu1 %v610_v58  ;;  %3917 = vmatpush3.msra.mxu0 %v4788_v7  ;;  %v735_v1 = vsub.f32 %v4814_v60, %v5646_v54  ;;  %v4875_v20 = vand.u32 4294901760, %v4836_v12  ;;  %v5709_v36 = vand.u32 4294901760, %v4828_v14 }
  0x33   : > { %v729_v53 = vand.u32 4294901760, %v728_v61  ;;  %3918 = vmatprep.subr.mxu0 %v4805_v29  ;;  %v4885_v32 = vsub.f32 %v4692_v52, %v4726_v47  ;;  %v4892_v30 = vand.u32 4294901760, %v4867_v2  ;;  %v5710_v52 = vand.u32 4294901760, %v4862_v62 }
  0x34   : > { %v617_v57 = vand.u32 4294901760, %v616_v50  ;;  %v623_v58 = vsub.f32 %v4828_v14, %v5709_v36  ;;  %v736_v54 = vand.u32 4294901760, %v735_v1  ;;  %3919 = vmatpush3.msra.mxu0 %v4817_v43  ;;  %v742_v50 = vsub.f32 %v4850_v19, %v5651_v38 }
  0x35   : > { %3943 = vmatprep.subr.mxu1 %v729_v53  ;;  %v4896_v36 = vsub.f32 %v4718_v26, %v4757_v63  ;;  %3920 = vmatprep.subr.mxu0 %v4831_v56  ;;  %v630_v53 = vsub.f32 %v4862_v62, %v5710_v52  ;;  %v5656_v1 = vand.u32 4294901760, %v4885_v32  ;;  %v442_v47 = vcombine.high %v440_v13, %v440_v13 }
  0x36   : > { %3944 = vmatpush3.msra.mxu1 %v617_v57  ;;  %v624_v61 = vand.u32 4294901760, %v623_v58  ;;  %v743_v38 = vand.u32 4294901760, %v742_v50  ;;  %3921 = vmatpush3.msra.mxu0 %v4858_v41  ;;  %v4905_v14 = vand.u32 4294901760, %v440_v13  ;;  %v4909_v57 = vsub.f32 %v4731_v27, %v4774_v39 }
  0x37   : > { %3945 = vmatprep.subr.mxu1 %v736_v54  ;;  %v5657_v19 = vand.u32 4294901760, %v4896_v36  ;;  %v631_v26 = vand.u32 4294901760, %v630_v53  ;;  %3922 = vmatprep.subr.mxu0 %v4875_v20  ;;  %v749_v58 = vsub.f32 %v4885_v32, %v5656_v1  ;;  %v4915_v54 = vand.u32 4294901760, %v442_v47 }
  0x38   : > { %5711 = vst [vmem:[#allocation26_spill] sm:$0xff] %v4905_v14  ;;  %3946 = vmatpush3.msra.mxu1 %v624_v61  ;;  %v4919_v50 = vsub.f32 %v4750_v49, %v4788_v7  ;;  %3923 = vmatpush3.msra.mxu0 %v4892_v30  ;;  %v4927_v52 = vsub.f32 %v440_v13, %v4905_v14  ;;  %v5713_v13 = vand.u32 4294901760, %v4909_v57  ;;  %vm1310_vm2 = vcmask 1043456  }
  0x39   : > { %5712 = vst [vmem:[#allocation27_spill] sm:$0xff] %v4915_v54  ;;  %3947 = vmatprep.subr.mxu1 %v743_v38  ;;  %v637_v27 = vsub.f32 %v4896_v36, %v5657_v19  ;;  %v4931_v53 = vsub.f32 %v4766_v44, %v4805_v29  ;;  %v750_v1 = vand.u32 4294901760, %v749_v58  ;;  %v4934_v49 = vsub.f32 %v442_v47, %v4915_v54 }
  0x3a   : > { %3948 = vmatpush3.msra.mxu1 %v631_v26  ;;  %3962 = vmatprep.subr.mxu0 %v4503_v18  ;;  %v5662_v38 = vand.u32 4294901760, %v4919_v50  ;;  %v4940_v19 = vsub.f32 %v4779_v37, %v4817_v43  ;;  %v756_v7 = vsub.f32 %v4909_v57, %v5713_v13  ;;  %v5665_v44 = vand.u32 4294901760, %v4927_v52 }
  0x3b   : > { %v638_v61 = vand.u32 4294901760, %v637_v27  ;;  %781 = vmatprep.mubr.f32.mxu1 %v4915_v54  ;;  %3949 = vmatprep.subr.mxu1 %v750_v1  ;;  %v4955_v27 = vsub.f32 %v4793_v33, %v4831_v56  ;;  %v5714_v1 = vand.u32 4294901760, %v4931_v53  ;;  %v4965_v54 = vsub.f32 %v4822_v51, %v4858_v41 }
  0x3c   : > { %v644_v58 = vsub.f32 %v4919_v50, %v5662_v38  ;;  %v757_v13 = vand.u32 4294901760, %v756_v7  ;;  %v549_v26 = vsub.f32 %v4927_v52, %v5665_v44  ;;  %v5715_v38 = vand.u32 4294901760, %v4934_v49 }
  0x3d   : > { %3950 = vmatpush3.msra.mxu1 %v638_v61  ;;  %v763_v47 = vsub.f32 %v4931_v53, %v5714_v1  ;;  %v5716_v61 = vand.u32 4294901760, %v4940_v19  ;;  %v5675_v56 = vand.u32 4294901760, %v4955_v27  ;;  %v5674_v1 = vand.u32 4294901760, %v4965_v54 }
  0x3e   : > { %v543_v37 = vsub.f32 %v4934_v49, %v5715_v38  ;;  %v645_v33 = vand.u32 4294901760, %v644_v58  ;;  %3951 = vmatprep.subr.mxu1 %v757_v13  ;;  %v550_v44 = vand.u32 4294901760, %v549_v26  ;;  %v4977_v51 = vsub.f32 %v4836_v12, %v4875_v20 }
  0x3f   : > { %v651_v7 = vsub.f32 %v4940_v19, %v5716_v61  ;;  %v764_v43 = vand.u32 4294901760, %v763_v47  ;;  %v770_v38 = vsub.f32 %v4955_v27, %v5675_v56  ;;  %v4984_v58 = vsub.f32 %v4867_v2, %v4892_v30  ;;  %v5718_v2 = vld [vmem:[#allocation5_spill] sm:$0xff]  ;;  %v5720_v61 = vld [vmem:[#allocation6_spill] sm:$0xff]  ;;  %v5733_v56 = vld [vmem:[#allocation19_spill] sm:$0xff] }
  0x40   : > { %v544_v41 = vand.u32 4294901760, %v543_v37  ;;  %3952 = vmatpush3.msra.mxu1 %v645_v33  ;;  %v658_v26 = vsub.f32 %v4965_v54, %v5674_v1  ;;  %v5673_v47 = vand.u32 4294901760, %v4977_v51  ;;  %v5732_v1 = vand.u32 4294901760, %v4503_v18 }
  0x41   : > { %v652_v29 = vand.u32 4294901760, %v651_v7  ;;  %5717 = vst [vmem:[#allocation28_spill] sm:$0xff] %v4984_v58  ;;  %3953 = vmatprep.subr.mxu1 %v764_v43  ;;  %v771_v12 = vand.u32 4294901760, %v770_v38  ;;  %v5672_v37 = vand.u32 4294901760, %v4984_v58  ;;  %v5721_v7 = vld [vmem:[#allocation24_spill] sm:$0xff]  ;;  %v5722_v38 = vld [vmem:[#allocation7_spill] sm:$0xff] }
  0x42   : > { %545 = vmatprep.mubr.f32.mxu0 %v544_v41  ;;  %v659_v13 = vand.u32 4294901760, %v658_v26  ;;  %v777_v33 = vsub.f32 %v4977_v51, %v5673_v47  ;;  %v5723_v26 = vld [vmem:[#allocation8_spill] sm:$0xff]  ;;  %v5740_v18 = vand.u32 4294901760, %v4563_v35  ;;  %vm1782_vm3 = vcmask 64512  }
  0x43   : > { %3954 = vmatpush3.msra.mxu1 %v652_v29  ;;  %551 = vmatmul.mubr.f32.vlgmr.msra.gmra.mxu0 %v550_v44  ;;  %v665_v43 = vsub.f32 %v4984_v58, %v5672_v37  ;;  %v5719_v44 = vld [vmem:[#allocation22_spill] sm:$0xff]  ;;  %v5730_v37 = vld [vmem:[#allocation15_spill] sm:$0xff]  ;;  %v5731_v47 = vld [vmem:[#allocation16_spill] sm:$0xff]  ;;  %vm2698_vm4 = vcmask 261120  }
  0x44   : > { %3963 = vmatpush3.msra.mxu0 %v4525_v23  ;;  %3955 = vmatprep.subr.mxu1 %v771_v12  ;;  %v778_v29 = vand.u32 4294901760, %v777_v33  ;;  %v5724_v12 = vld [vmem:[#allocation9_spill] sm:$0xff]  ;;  %v5726_v33 = vld [vmem:[#allocation11_spill] sm:$0xff] }
  0x45   : > { %3964 = vmatprep.subr.mxu0 %v4531_v25  ;;  %3956 = vmatpush3.msra.mxu1 %v659_v13  ;;  %v666_v41 = vand.u32 4294901760, %v665_v43  ;;  %v5725_v13 = vld [vmem:[#allocation10_spill] sm:$0xff]  ;;  %v5727_v43 = vld [vmem:[#allocation12_spill] sm:$0xff] }
  0x46   : > { %3965 = vmatpush3.msra.mxu0 %v4554_v31  ;;  %918 = vmatprep.mubr.f32.mxu0 %v4934_v49 }
  0x47   : > { %3966 = vmatprep.subr.mxu0 %v4563_v35  ;;  %3957 = vmatprep.subr.mxu1 %v778_v29  ;;  %v5728_v29 = vld [vmem:[#allocation13_spill] sm:$0xff]  ;;  %v5746_v35 = vand.u32 4294901760, %v4927_v52 }
  0x48   : > { %3967 = vmatpush3.msra.mxu0 %v4579_v40  ;;  %3958 = vmatpush3.msra.mxu1 %v666_v41  ;;  %v5729_v41 = vld [vmem:[#allocation14_spill] sm:$0xff] }
  0x49   : > { %3968 = vmatprep.subr.mxu0 %v4593_v45  ;;  %783 = vmatmul.mubr.f32.vlgmr.msra.gmra.mxu1 %v4905_v14  ;;  %v5734_v14 = vand.u32 4294901760, %v4525_v23  ;;  %v5742_v23 = vand.u32 4294901760, %v4579_v40  ;;  %v5748_v40 = vand.u32 4294901760, %v4657_v8 }
  0x4a   : > { %3969 = vmatpush3.msra.mxu0 %v4628_v59  ;;  %3997 = vmatprep.subr.mxu1 %v4465_v3 }
  0x4b   : > { %3970 = vmatprep.subr.mxu0 %v4643_v0  ;;  %3998 = vmatpush3.msra.mxu1 %v4467_v4 }
  0x4c   : > { %3971 = vmatpush3.msra.mxu0 %v4657_v8  ;;  %3999 = vmatprep.subr.mxu1 %v4469_v5  ;;  %v5767_v8 = vand.u32 4294901760, %v4955_v27 }
  0x4d   : > { %3972 = vmatprep.subr.mxu0 %v4671_v42  ;;  %4000 = vmatpush3.msra.mxu1 %v4480_v9 }
  0x4e   : > { %3973 = vmatpush3.msra.mxu0 %v4684_v48  ;;  %4001 = vmatprep.subr.mxu1 %v4482_v10 }
  0x4f   : > { %3974 = vmatprep.subr.mxu0 %v4701_v21  ;;  %4002 = vmatpush3.msra.mxu1 %v4484_v11 }
  0x50   : > { %3975 = vmatpush3.msra.mxu0 %v4713_v6  ;;  %4003 = vmatprep.subr.mxu1 %v4496_v15 }
  0x51   : > { %3976 = vmatprep.subr.mxu0 %v4745_v55  ;;  %4004 = vmatpush3.msra.mxu1 %v4498_v16 }
  0x52   : > { %3977 = vmatpush3.msra.mxu0 %v4761_v28  ;;  %4005 = vmatprep.subr.mxu1 %v4500_v17 }
  0x53   : > { %3978 = vmatprep.subr.mxu0 %v4785_v34  ;;  %4006 = vmatpush3.msra.mxu1 %v4522_v22 }
  0x54   : > { %3979 = vmatpush3.msra.mxu0 %v4802_v46  ;;  %4007 = vmatprep.subr.mxu1 %v4528_v24 }
  0x55   : > { %3980 = vmatprep.subr.mxu0 %v4814_v60  ;;  %4008 = vmatpush3.msra.mxu1 %v5718_v2 }
  0x56   : > { %3981 = vmatpush3.msra.mxu0 %v5719_v44  ;;  %4009 = vmatprep.subr.mxu1 %v5720_v61 }
  0x57   : > { %3982 = vmatprep.subr.mxu0 %v5721_v7  ;;  %4010 = vmatpush3.msra.mxu1 %v5722_v38 }
  0x58   : > { %3983 = vmatpush3.msra.mxu0 %v4862_v62  ;;  %4011 = vmatprep.subr.mxu1 %v5723_v26 }
  0x59   : > { %3984 = vmatprep.subr.mxu0 %v4885_v32  ;;  %4012 = vmatpush3.msra.mxu1 %v5724_v12 }
  0x5a   : > { %3985 = vmatpush3.msra.mxu0 %v4896_v36  ;;  %4013 = vmatprep.subr.mxu1 %v5725_v13 }
  0x5b   : > { %3986 = vmatprep.subr.mxu0 %v4909_v57  ;;  %4014 = vmatpush3.msra.mxu1 %v5726_v33 }
  0x5c   : > { %3987 = vmatpush3.msra.mxu0 %v4919_v50  ;;  %4015 = vmatprep.subr.mxu1 %v5727_v43 }
  0x5d   : > { %3988 = vmatprep.subr.mxu0 %v4931_v53  ;;  %4016 = vmatpush3.msra.mxu1 %v5728_v29 }
  0x5e   : > { %3989 = vmatpush3.msra.mxu0 %v4940_v19  ;;  %4017 = vmatprep.subr.mxu1 %v5729_v41 }
  0x5f   : > { %3990 = vmatprep.subr.mxu0 %v4955_v27  ;;  %4018 = vmatpush3.msra.mxu1 %v5730_v37  ;;  %v5735_v37 = vld [vmem:[#allocation20_spill] sm:$0xff] }
  0x60   : > { %3991 = vmatpush3.msra.mxu0 %v4965_v54  ;;  %4019 = vmatprep.subr.mxu1 %v5731_v47  ;;  %v5736_v47 = vand.u32 4294901760, %v4531_v25  ;;  %v5743_v25 = vand.u32 4294901760, %v4593_v45  ;;  %v5749_v45 = vand.u32 4294901760, %v4671_v42  ;;  %v5768_v42 = vand.u32 4294901760, %v4965_v54 }
  0x61   : > { %3992 = vmatprep.subr.mxu0 %v4977_v51  ;;  %4020 = vmatpush3.msra.mxu1 %v4757_v63  ;;  %v5737_v63 = vld [vmem:[#allocation21_spill] sm:$0xff]  ;;  %v4344_v54 = vmov 0.0  }
  0x62   : > { %3993 = vmatpush3.msra.mxu0 %v4984_v58  ;;  %4021 = vmatprep.subr.mxu1 %v4774_v39  ;;  %v5738_v58 = vand.u32 4294901760, %v4554_v31  ;;  %v5739_v39 = vld [vmem:[#allocation23_spill] sm:$0xff]  ;;  %v5744_v31 = vand.u32 4294901760, %v4934_v49 }
  0x63   : > { %921 = vmatmul.mubr.f32.vlgmr.msra.gmra.mxu0 %v4927_v52  ;;  %4032 = vmatprep.subr.mxu0 %v5732_v1  ;;  %v5741_v1 = vld [vmem:[#allocation25_spill] sm:$0xff]  ;;  %v385_v52 = vld [vmem:[%s5778_s1] sm:$0xff]  ;;  %s4347_s1 = smov [#allocation2]  }
  0x64   : > { %4022 = vmatpush3.msra.mxu1 %v5733_v56  ;;  %4033 = vmatpush3.msra.mxu0 %v5734_v14  ;;  %v5745_v14 = vand.u32 4294901760, %v4628_v59  ;;  %v5750_v59 = vand.u32 4294901760, %v4684_v48  ;;  %v5769_v48 = vld [vmem:[#allocation15_spill] sm:$0xff]  ;;  %v1308_v27 = vsel %vm1306_vm1, %v385_v52, 0  ;;  %s4286_s21 = sshll.u32 %s4347_s1, 4  ;;  %s4287_s21 = int_to_ptr.vmem [resolvable:$false] %s4286_s21 }
  0x65   : > { %4023 = vmatprep.subr.mxu1 %v5735_v37  ;;  %4034 = vmatprep.subr.mxu0 %v5736_v47  ;;  %s4288_s30 = scalar_lea.vmem %s4287_s21, 256  ;;  %p4289_p0 = scmp.lt.s32.totalorder %s3818_s14, %s4287_s21 }
  0x66   : > { %4024 = vmatpush3.msra.mxu1 %v5737_v63  ;;  %4035 = vmatpush3.msra.mxu0 %v5738_v58  ;;  %v5747_v58 = vand.u32 4294901760, %v4643_v0  ;;  %v5751_v0 = vand.u32 4294901760, %v4701_v21  ;;  %v5770_v21 = vand.u32 4294901760, %v4977_v51  ;;  %p4290_p1 = scmp.lt.s32.totalorder %s4288_s30, %s4282_s0 }
  0x67   : > { %4025 = vmatprep.subr.mxu1 %v5739_v39  ;;  %4036 = vmatprep.subr.mxu0 %v5740_v18 }
  0x68   : > { %4026 = vmatpush3.msra.mxu1 %v5741_v1  ;;  %4037 = vmatpush3.msra.mxu0 %v5742_v23  ;;  %p4291_p2 = por %p4290_p1, %p4289_p0 }
  0x69   : > { %4027 = vmatprep.subr.mxu1 %v4875_v20  ;;  %4038 = vmatprep.subr.mxu0 %v5743_v25 }
  0x6a   : > { %4028 = vmatpush3.msra.mxu1 %v4892_v30  ;;  %1025 = vmatprep.mubr.f32.mxu1 %v5744_v31  ;;  %p4292_p3 = pnand %p4291_p2, %p4285_p13 }
  0x6b   : > { %4039 = vmatpush3.msra.mxu0 %v5745_v14  ;;  %1029 = vmatmul.mubr.f32.vlgmr.msra.gmra.mxu1 %v5746_v35 }
  0x6c   : > { %4040 = vmatprep.subr.mxu0 %v5747_v58  ;;  %4067 = vmatprep.subr.mxu1 %v4465_v3  ;;  %v5752_v3 = vand.u32 4294901760, %v4713_v6  ;;  %v5771_v6 = vld [vmem:[#allocation16_spill] sm:$0xff] }
  0x6d   : > { %4041 = vmatpush3.msra.mxu0 %v5748_v40  ;;  %4068 = vmatpush3.msra.mxu1 %v4467_v4  ;;  %v5753_v4 = vand.u32 4294901760, %v4745_v55  ;;  %v5764_v55 = vand.u32 4294901760, %v4919_v50 }
  0x6e   : > { %4042 = vmatprep.subr.mxu0 %v5749_v45  ;;  %4069 = vmatprep.subr.mxu1 %v4469_v5  ;;  %v5754_v5 = vand.u32 4294901760, %v4761_v28  ;;  %v5772_v28 = vld [vmem:[#allocation28_spill] sm:$0xff] }
  0x6f   : > { %4043 = vmatpush3.msra.mxu0 %v5750_v59  ;;  %4070 = vmatpush3.msra.mxu1 %v4480_v9  ;;  %v5755_v9 = vand.u32 4294901760, %v4785_v34  ;;  %v5763_v34 = vand.u32 4294901760, %v4909_v57  ;;  %v5777_v57 = vld [vmem:[#allocation18_spill] sm:$0xff] }
  0x70   : > { %4044 = vmatprep.subr.mxu0 %v5751_v0  ;;  %4071 = vmatprep.subr.mxu1 %v4482_v10  ;;  %v5756_v10 = vand.u32 4294901760, %v4802_v46  ;;  %v5774_v46 = vld [vmem:[#allocation27_spill] sm:$0xff] }
  0x71   : > { %4045 = vmatpush3.msra.mxu0 %v5752_v3  ;;  %4072 = vmatpush3.msra.mxu1 %v4484_v11  ;;  %v5757_v11 = vand.u32 4294901760, %v4814_v60  ;;  %v5766_v60 = vand.u32 4294901760, %v4940_v19  ;;  %v5773_v19 = vand.u32 4294901760, %v5772_v28 }
  0x72   : > { %4046 = vmatprep.subr.mxu0 %v5753_v4  ;;  %4073 = vmatprep.subr.mxu1 %v4496_v15  ;;  %v5758_v15 = vand.u32 4294901760, %v5719_v44 }
  0x73   : > { %4047 = vmatpush3.msra.mxu0 %v5754_v5  ;;  %4074 = vmatpush3.msra.mxu1 %v4498_v16  ;;  %v5759_v16 = vand.u32 4294901760, %v5721_v7  ;;  %v389_v5 = vld [vmem:[%s5603_s5] sm:$0xf] }
  0x74   : > { %4048 = vmatprep.subr.mxu0 %v5755_v9  ;;  %4075 = vmatprep.subr.mxu1 %v4500_v17  ;;  %v5760_v17 = vand.u32 4294901760, %v4862_v62  ;;  %v5775_v62 = vld [vmem:[#allocation17_spill] sm:$0xff]  ;;  %v391_v9 = vld [vmem:[%s5605_s7] sm:$0xf] }
  0x75   : > { %4049 = vmatpush3.msra.mxu0 %v5756_v10  ;;  %4076 = vmatpush3.msra.mxu1 %v4522_v22  ;;  %v5761_v22 = vand.u32 4294901760, %v4885_v32  ;;  %v5765_v32 = vand.u32 4294901760, %v4931_v53 }
  0x76   : > { %4050 = vmatprep.subr.mxu0 %v5757_v11  ;;  %4077 = vmatprep.subr.mxu1 %v4528_v24  ;;  %v5762_v24 = vand.u32 4294901760, %v4896_v36  ;;  %v5776_v36 = vld [vmem:[#allocation26_spill] sm:$0xff] }
  0x77   : > { %4051 = vmatpush3.msra.mxu0 %v5758_v15  ;;  %4078 = vmatpush3.msra.mxu1 %v5718_v2 }
  0x78   : > { %4052 = vmatprep.subr.mxu0 %v5759_v16  ;;  %4079 = vmatprep.subr.mxu1 %v5720_v61 }
  0x79   : > { %4053 = vmatpush3.msra.mxu0 %v5760_v17  ;;  %4080 = vmatpush3.msra.mxu1 %v5722_v38 }
  0x7a   : > { %4054 = vmatprep.subr.mxu0 %v5761_v22  ;;  %4081 = vmatprep.subr.mxu1 %v5723_v26 }
  0x7b   : > { %4055 = vmatpush3.msra.mxu0 %v5762_v24  ;;  %4082 = vmatpush3.msra.mxu1 %v5724_v12 }
  0x7c   : > { %4056 = vmatprep.subr.mxu0 %v5763_v34  ;;  %4083 = vmatprep.subr.mxu1 %v5725_v13 }
  0x7d   : > { %4057 = vmatpush3.msra.mxu0 %v5764_v55  ;;  %4084 = vmatpush3.msra.mxu1 %v5726_v33  ;;  %v388_v55 = vld [vmem:[%s5602_s4] sm:$0xf] }
  0x7e   : > { %4058 = vmatprep.subr.mxu0 %v5765_v32  ;;  %4085 = vmatprep.subr.mxu1 %v5727_v43 }
  0x7f   : > { %4059 = vmatpush3.msra.mxu0 %v5766_v60  ;;  %4086 = vmatpush3.msra.mxu1 %v5728_v29 }
  0x80   : > { %4060 = vmatprep.subr.mxu0 %v5767_v8  ;;  %4087 = vmatprep.subr.mxu1 %v5729_v41 }
  0x81   : > { %4061 = vmatpush3.msra.mxu0 %v5768_v42  ;;  %4088 = vmatpush3.msra.mxu1 %v5769_v48  ;;  %v1784_v48 = vsel %vm1782_vm3, %v388_v55, 0 }
  0x82   : > { %4062 = vmatprep.subr.mxu0 %v5770_v21  ;;  %4089 = vmatprep.subr.mxu1 %v5771_v6 }
  0x83   : > { %4063 = vmatpush3.msra.mxu0 %v5773_v19  ;;  %1195 = vmatprep.mubr.f32.mxu0 %v5774_v46 }
  0x84   : > { %4090 = vmatpush3.msra.mxu1 %v5775_v62  ;;  %1197 = vmatmul.mubr.f32.vlgmr.msra.gmra.mxu0 %v5776_v36 }
  0x85   : > { %4091 = vmatprep.subr.mxu1 %v5777_v57  ;;  %1299 = vmatprep.mubr.f32.mxu1 %v5774_v46  ;;  %v1852_v46 = vand.u32 4294901760, %v1784_v48 }
  0x86   : > { %4092 = vmatpush3.msra.mxu1 %v5733_v56  ;;  %4138 = vmatprep.subr.mxu0 %v4344_v54 }
  0x87   : > { %4093 = vmatprep.subr.mxu1 %v5735_v37  ;;  %4140 = vmatprep.mubr.msk.f32.mxu0 %vm4345_vm0, %v4344_v54  ;;  %v1380_v37 = vand.u32 4294901760, %v1308_v27 }
  0x88   : > { %4094 = vmatpush3.msra.mxu1 %v5737_v63 }
  0x89   : > { %4095 = vmatprep.subr.mxu1 %v5739_v39  ;;  %v386_v39 = vld [vmem:[%s5600_s2] sm:$0xff]  ;;  %v1381_v26 = vsub.f32 %v1308_v27, %v1380_v37 }
  0x8a   : > { %4096 = vmatpush3.msra.mxu1 %v5741_v1 }
  0x8b   : > { %4097 = vmatprep.subr.mxu1 %v4875_v20  ;;  %v4346_v20 = vmov 0   ;;  %v1382_v41 = vand.u32 4294901760, %v1381_v26 }
  0x8c   : > { %4098 = vmatpush3.msra.mxu1 %v4892_v30  ;;  %4270 = vset.pattern.permute.xlu0 %v4346_v20  ;;  %v387_v30 = vld [vmem:[%s5601_s3] sm:$0xff] }
  0x8d   : > { %1301 = vmatmul.mubr.f32.vlgmr.msra.gmra.mxu1 %v5776_v36  ;;  %4143 = vmatprep.subr.mxu1 %v4344_v54  ;;  %v1383_v14 = vsub.f32 %v1381_v26, %v1382_v41 }
  0x8e   : > { %4145 = vmatprep.mubr.msk.f32.mxu1 %vm4345_vm0, %v4344_v54  ;;  %4271 = vset.pattern.permute.xlu1 %v4346_v20  ;;  %v1853_v20 = vsub.f32 %v1784_v48, %v1852_v46 }
  0x8f   : > { %1762 = vperm.xlu0 %4270, %v386_v39   ;;  %v1384_v40 = vand.u32 4294901760, %v1383_v14  ;;  %1779 = vperm.xlu1 %4271, %v389_v5   ;;  %v428_v14 = vld [vmem:[%s5607_s9 + $0x20] sm:$0xff] }
  0x93   : > { %1768 = vperm.xlu0 %4270, %v387_v30   ;;  %2240 = vperm.xlu1 %4271, %v391_v9  }
 0x103   : > { %v3924_v63 = vpop.f32.mrf.mxu0 }
 0x105   : > { %v3925_v56 = vpop.f32.mrf.mxu0 }
 0x106   : > { %v3926_v7 = vadd.f32 %v3925_v56, %v3924_v63  ;;  %v390_v56 = vld [vmem:[%s5604_s6] sm:$0xf] }
 0x109   : > { %v3959_v50 = vpop.f32.mrf.mxu1 }
 0x10a   : > { %v1763_v21 = vpop.permute.xlu0 %1762 }
 0x10b   : > { %v3960_v49 = vpop.f32.mrf.mxu1 }
 0x10c   : > { %v3961_v44 = vadd.f32 %v3960_v49, %v3959_v50  ;;  %v1854_v50 = vand.u32 4294901760, %v1853_v20 }
 0x10e   : > { %v785_v13 = vadd.f32 %v3961_v44, %v3926_v7  ;;  %v1769_v39 = vpop.permute.xlu0 %1768  ;;  %v1855_v27 = vsub.f32 %v1853_v20, %v1854_v50 }
 0x123   : > { %v3994_v53 = vpop.f32.mrf.mxu0 }
 0x125   : > { %v3995_v51 = vpop.f32.mrf.mxu0 }
 0x126   : > { %v3996_v38 = vadd.f32 %v3995_v51, %v3994_v53  ;;  %v2244_v53 = vsel %vm1782_vm3, %v390_v56, 0 }
 0x128   : > { %v923_v43 = vadd.f32 %v3996_v38, %v785_v13 }
 0x12b   : > { %v4029_v47 = vpop.f32.mrf.mxu1 }
 0x12d   : > { %v4030_v61 = vpop.f32.mrf.mxu1 }
 0x12e   : > { %v4031_v33 = vadd.f32 %v4030_v61, %v4029_v47  ;;  %v2312_v47 = vand.u32 4294901760, %v2244_v53 }
 0x130   : > { %v1031_v1 = vadd.f32 %v4031_v33, %v923_v43  ;;  %v2313_v61 = vsub.f32 %v2244_v53, %v2312_v47 }
 0x144   : > { %v4064_v2 = vpop.f32.mrf.mxu0 }
 0x146   : > { %v4065_v12 = vpop.f32.mrf.mxu0 }
 0x147   : > { %v4066_v29 = vadd.f32 %v4065_v12, %v4064_v2  ;;  %v1856_v2 = vand.u32 4294901760, %v1855_v27 }
 0x149   : > { %v1199_v25 = vadd.f32 %v4066_v29, %v1031_v1  ;;  %v431_v29 = vld [vmem:[%s5607_s9 + $0x38] sm:$0xff] }
 0x14d   : > { %v4099_v18 = vpop.f32.mrf.mxu1 }
 0x14f   : > { %v4100_v23 = vpop.f32.mrf.mxu1 }
 0x150   : > { %v4101_v31 = vadd.f32 %v4100_v23, %v4099_v18  ;;  %v430_v18 = vld [vmem:[%s5607_s9 + $0x30] sm:$0xff]  ;;  %v429_v23 = vld [vmem:[%s5607_s9 + $0x28] sm:$0xff] }
 0x151   : > { %v5254_v1 = vand.u32 4294901760, %v430_v18 }
 0x152   : > { %v1303_v35 = vadd.f32 %v4101_v31, %v1199_v25  ;;  %v5262_v31 = vand.u32 4294901760, %v429_v23 }
 0x154   : > { %v1312_v58 = vsel %vm1310_vm2, %v1303_v35, 0  ;;  %v5269_v35 = vsub.f32 %v430_v18, %v5254_v1 }
 0x155   : > { %v1345_v45 = vand.u32 4294901760, %v1312_v58 }
 0x157   : > { %v1422_v59 = vsub.f32 %v1312_v58, %v1345_v45  ;;  %4139 = vmatpush3.msra.mxu0 %v1345_v45  ;;  %v5271_v58 = vand.u32 4294901760, %v428_v14 }
 0x158   : > { %4141 = vmatmul.mubr.f32.vlgmr.msra.gmra.mxu0 %v1384_v40  ;;  %4148 = vmatprep.subr.mxu0 %v4344_v54  ;;  %v427_v40 = vld [vmem:[%s5607_s9 + $0x18] sm:$0xff] }
 0x159   : > { %4149 = vmatpush3.msra.mxu0 %v1422_v59  ;;  %4150 = vmatprep.mubr.msk.f32.mxu0 %vm4345_vm0, %v4344_v54  ;;  %v1423_v0 = vand.u32 4294901760, %v1422_v59  ;;  %v5289_v5 = vsub.f32 %v428_v14, %v5271_v58 }
 0x15a   : > { %4158 = vmatprep.subr.mxu0 %v4344_v54 }
 0x15b   : > { %v1424_v3 = vsub.f32 %v1422_v59, %v1423_v0  ;;  %v5279_v59 = vsub.f32 %v429_v23, %v5262_v31 }
 0x15c   : > { %4151 = vmatmul.mubr.f32.vlgmr.msra.gmra.mxu0 %v1381_v26  ;;  %v2314_v26 = vand.u32 4294901760, %v2313_v61 }
 0x15d   : > { %4159 = vmatpush3.msra.mxu0 %v1423_v0  ;;  %v1425_v4 = vand.u32 4294901760, %v1424_v3  ;;  %4160 = vmatprep.mubr.msk.f32.mxu0 %vm4345_vm0, %v4344_v54  ;;  %v5281_v0 = vand.u32 4294901760, %v427_v40  ;;  %v426_v3 = vld [vmem:[%s5607_s9 + $0x10] sm:$0xff] }
 0x15e   : > { %4168 = vmatprep.subr.mxu0 %v4344_v54  ;;  %v2315_v33 = vsub.f32 %v2313_v61, %v2314_v26  ;;  %v5291_v9 = vand.u32 4294901760, %v426_v3 }
 0x15f   : > { %4144 = vmatpush3.msra.mxu1 %v1425_v4  ;;  %v2818_v4 = vand.u32 4294901760, %v5269_v35 }
 0x160   : > { %4146 = vmatmul.mubr.f32.vlgmr.msra.gmra.mxu1 %v1380_v37  ;;  %4153 = vmatprep.subr.mxu1 %v4344_v54  ;;  %v2316_v43 = vand.u32 4294901760, %v2315_v33  ;;  %v5315_v55 = vsub.f32 %v426_v3, %v5291_v9 }
 0x161   : > { %4154 = vmatpush3.msra.mxu1 %v1345_v45  ;;  %4155 = vmatprep.mubr.msk.f32.mxu1 %vm4345_vm0, %v4344_v54 }
 0x162   : > { %4163 = vmatprep.subr.mxu1 %v4344_v54  ;;  %4161 = vmatmul.mubr.f32.vlgmr.msra.gmra.mxu0 %v1380_v37 }
 0x163   : > { %4170 = vmatprep.mubr.msk.f32.mxu0 %vm4345_vm0, %v4344_v54 }
 0x164   : > { %4156 = vmatmul.mubr.f32.vlgmr.msra.gmra.mxu1 %v1382_v41  ;;  %v5249_v41 = vand.u32 4294901760, %v431_v29 }
 0x165   : > { %4164 = vmatpush3.msra.mxu1 %v1345_v45  ;;  %4165 = vmatprep.mubr.msk.f32.mxu1 %vm4345_vm0, %v4344_v54 }
 0x166   : > { %4173 = vmatprep.subr.mxu1 %v4344_v54  ;;  %v5260_v25 = vsub.f32 %v431_v29, %v5249_v41 }
 0x168   : > { %4166 = vmatmul.mubr.f32.vlgmr.msra.gmra.mxu1 %v1380_v37  ;;  %v2812_v45 = vand.u32 4294901760, %v5260_v25 }
 0x169   : > { %4175 = vmatprep.mubr.msk.f32.mxu1 %vm4345_vm0, %v4344_v54 }
 0x218   : > { %v1386_v10 = vpop.f32.mrf.mxu0 }
 0x21a   : > { %v4142_v11 = vpop.f32.mrf.mxu0 }
 0x21b   : > { %v2813_v11 = vsub.f32 %v5260_v25, %v2812_v45 }
 0x21c   : > { %v1536_v15 = vpop.f32.mrf.mxu0 }
 0x21e   : > { %v4152_v16 = vpop.f32.mrf.mxu0 }
 0x21f   : > { %v5302_v16 = vsub.f32 %v427_v40, %v5281_v0 }
 0x220   : > { %v1462_v17 = vpop.f32.mrf.mxu1 }
 0x221   : > { %v1463_v22 = vadd.f32 %v1462_v17, %v1386_v10  ;;  %v425_v10 = vld [vmem:[%s5607_s9 + $0x8] sm:$0xff] }
 0x222   : > { %v4147_v24 = vpop.f32.mrf.mxu1  ;;  %v1684_v34 = vpop.f32.mrf.mxu0  ;;  %v5304_v17 = vand.u32 4294901760, %v425_v10 }
 0x223   : > { %v1537_v32 = vadd.f32 %v1536_v15, %v1463_v22  ;;  %v2824_v15 = vand.u32 4294901760, %v5279_v59  ;;  %v424_v22 = vld [vmem:[%s5607_s9] sm:$0xff]  ;;  %v2819_v24 = vsub.f32 %v5269_v35, %v2818_v4 }
 0x224   : > { %v1610_v60 = vpop.f32.mrf.mxu1  ;;  %v4162_v8 = vpop.f32.mrf.mxu0  ;;  %v5325_v48 = vsub.f32 %v425_v10, %v5304_v17 }
 0x225   : > { %v1611_v42 = vadd.f32 %v1610_v60, %v1537_v32  ;;  %v5317_v32 = vand.u32 4294901760, %v424_v22  ;;  %v2814_v60 = vand.u32 4294901760, %v2813_v11  ;;  %v2825_v8 = vsub.f32 %v5279_v59, %v2824_v15 }
 0x226   : > { %v4157_v6 = vpop.f32.mrf.mxu1 }
 0x227   : > { %v1685_v28 = vadd.f32 %v1684_v34, %v1611_v42  ;;  %v2830_v34 = vand.u32 4294901760, %v5289_v5  ;;  %v2836_v42 = vand.u32 4294901760, %v5302_v16 }
 0x228   : > { %v1756_v19 = vpop.f32.mrf.mxu1 }
 0x229   : > { %v1757_v62 = vadd.f32 %v1756_v19, %v1685_v28  ;;  %v2831_v6 = vsub.f32 %v5289_v5, %v2830_v34  ;;  %v2842_v28 = vand.u32 4294901760, %v5315_v55  ;;  %v5333_v19 = vsub.f32 %v424_v22, %v5317_v32 }
 0x22a   : > { %v4167_v36 = vpop.f32.mrf.mxu1 }
 0x22b   : > { %v1765_v57 = vmul.f32 %v1763_v21, %v1757_v62  ;;  %v2820_v21 = vand.u32 4294901760, %v2819_v24  ;;  %v2837_v62 = vsub.f32 %v5302_v16, %v2836_v42  ;;  %v2848_v36 = vand.u32 4294901760, %v5325_v48 }
 0x22d   : > { %v1771_v30 = vadd.f32 %v1769_v39, %v1765_v57  ;;  %v2832_v57 = vand.u32 4294901760, %v2831_v6  ;;  %v2843_v39 = vsub.f32 %v5315_v55, %v2842_v28 }
 0x22f   : > { %v1772_v63 = vadd.f32 3.0, %v1771_v30  ;;  %v2844_v56 = vand.u32 4294901760, %v2843_v39 }
 0x231   : > { %v1773_v52 = vmax.f32 %v1772_v63, 0.0  ;;  %v2849_v63 = vsub.f32 %v5325_v48, %v2848_v36 }
 0x233   : > { %v1774_v49 = vmin.f32 %v1773_v52, 6.0  ;;  %v2850_v52 = vand.u32 4294901760, %v2849_v63 }
 0x235   : > { %v1775_v51 = vmul.f32 0.16666667, %v1774_v49 }
 0x237   : > { %v1776_v37 = vmul.f32 %v1775_v51, %v1771_v30  ;;  %v2838_v30 = vand.u32 4294901760, %v2837_v62 }
 0x239   : > { %v1817_v44 = vand.u32 4294901760, %v1776_v37 }
 0x23b   : > { %4169 = vmatpush3.msra.mxu0 %v1817_v44  ;;  %v1894_v7 = vsub.f32 %v1776_v37, %v1817_v44 }
 0x23c   : > { %4171 = vmatmul.mubr.f32.vlgmr.msra.gmra.mxu0 %v1856_v2  ;;  %4178 = vmatprep.subr.mxu0 %v4344_v54 }
 0x23d   : > { %4179 = vmatpush3.msra.mxu0 %v1894_v7  ;;  %4180 = vmatprep.mubr.msk.f32.mxu0 %vm4345_vm0, %v4344_v54  ;;  %v1895_v38 = vand.u32 4294901760, %v1894_v7 }
 0x23e   : > { %4188 = vmatprep.subr.mxu0 %v4344_v54 }
 0x23f   : > { %v1896_v12 = vsub.f32 %v1894_v7, %v1895_v38 }
 0x240   : > { %4181 = vmatmul.mubr.f32.vlgmr.msra.gmra.mxu0 %v1853_v20  ;;  %v2854_v20 = vand.u32 4294901760, %v5333_v19 }
 0x241   : > { %4189 = vmatpush3.msra.mxu0 %v1895_v38  ;;  %v1897_v13 = vand.u32 4294901760, %v1896_v12  ;;  %4190 = vmatprep.mubr.msk.f32.mxu0 %vm4345_vm0, %v4344_v54 }
 0x242   : > { %4198 = vmatprep.subr.mxu0 %v4344_v54 }
 0x243   : > { %4174 = vmatpush3.msra.mxu1 %v1897_v13 }
 0x244   : > { %4176 = vmatmul.mubr.f32.vlgmr.msra.gmra.mxu1 %v1852_v46  ;;  %4183 = vmatprep.subr.mxu1 %v4344_v54 }
 0x245   : > { %4191 = vmatmul.mubr.f32.vlgmr.msra.gmra.mxu0 %v1852_v46  ;;  %4184 = vmatpush3.msra.mxu1 %v1817_v44 }
 0x246   : > { %4199 = vmatpush3.msra.mxu0 %v1817_v44  ;;  %4185 = vmatprep.mubr.msk.f32.mxu1 %vm4345_vm0, %v4344_v54 }
 0x247   : > { %4193 = vmatprep.subr.mxu1 %v4344_v54  ;;  %4200 = vmatprep.mubr.msk.f32.mxu0 %vm4345_vm0, %v4344_v54 }
 0x248   : > { %4208 = vmatprep.subr.mxu0 %v4344_v54  ;;  %4186 = vmatmul.mubr.f32.vlgmr.msra.gmra.mxu1 %v1854_v50  ;;  %v2855_v50 = vsub.f32 %v5333_v19, %v2854_v20 }
 0x249   : > { %4194 = vmatpush3.msra.mxu1 %v1817_v44  ;;  %4201 = vmatmul.mubr.f32.vlgmr.msra.gmra.mxu0 %v2316_v43 }
 0x24a   : > { %4209 = vmatpush3.msra.mxu0 %v1894_v7  ;;  %4195 = vmatprep.mubr.msk.f32.mxu1 %vm4345_vm0, %v4344_v54  ;;  %v2856_v53 = vand.u32 4294901760, %v2855_v50 }
 0x24b   : > { %4203 = vmatprep.subr.mxu1 %v4344_v54  ;;  %4210 = vmatprep.mubr.msk.f32.mxu0 %vm4345_vm0, %v4344_v54 }
 0x24c   : > { %4218 = vmatprep.subr.mxu0 %v4344_v54  ;;  %4196 = vmatmul.mubr.f32.vlgmr.msra.gmra.mxu1 %v1852_v46  ;;  %v2826_v46 = vand.u32 4294901760, %v2825_v8 }
 0x24d   : > { %4204 = vmatpush3.msra.mxu1 %v1897_v13  ;;  %4211 = vmatmul.mubr.f32.vlgmr.msra.gmra.mxu0 %v2313_v61 }
 0x24e   : > { %4219 = vmatpush3.msra.mxu0 %v1895_v38  ;;  %4205 = vmatprep.mubr.msk.f32.mxu1 %vm4345_vm0, %v4344_v54 }
 0x24f   : > { %4213 = vmatprep.subr.mxu1 %v4344_v54  ;;  %4220 = vmatprep.mubr.msk.f32.mxu0 %vm4345_vm0, %v4344_v54 }
 0x250   : > { %4206 = vmatmul.mubr.f32.vlgmr.msra.gmra.mxu1 %v2312_v47  ;;  %2727 = vmatprep.subr.mxu0 %v5249_v41 }
 0x251   : > { %4214 = vmatpush3.msra.mxu1 %v1817_v44  ;;  %4215 = vmatprep.mubr.msk.f32.mxu1 %vm4345_vm0, %v4344_v54 }
 0x252   : > { %4223 = vmatprep.subr.mxu1 %v4344_v54  ;;  %4221 = vmatmul.mubr.f32.vlgmr.msra.gmra.mxu0 %v2312_v47 }
 0x253   : > { %2774 = vmatprep.mubr.f32.mxu0 %v4344_v54  ;;  %2729 = vmatpush1.msra.mxu0 %v5254_v1 }
 0x254   : > { %4216 = vmatmul.mubr.f32.vlgmr.msra.gmra.mxu1 %v2314_v26  ;;  %2731 = vmatprep.subr.mxu0 %v5262_v31 }
 0x255   : > { %4224 = vmatpush3.msra.mxu1 %v1817_v44  ;;  %4225 = vmatprep.mubr.msk.f32.mxu1 %vm4345_vm0, %v4344_v54 }
 0x256   : > { %2733 = vmatpush1.msra.mxu0 %v5271_v58  ;;  %2815 = vmatprep.subr.mxu1 %v2814_v60 }
 0x257   : > { %2735 = vmatprep.subr.mxu0 %v5281_v0 }
 0x258   : > { %4226 = vmatmul.mubr.f32.vlgmr.msra.gmra.mxu1 %v2312_v47  ;;  %2737 = vmatpush1.msra.mxu0 %v5291_v9  ;;  %v1780_v47 = vpop.permute.xlu1 %1779 }
 0x259   : > { %2890 = vmatprep.mubr.f32.mxu1 %v4344_v54  ;;  %2739 = vmatprep.subr.mxu0 %v5304_v17 }
 0x25a   : > { %2741 = vmatpush1.msra.mxu0 %v5317_v32  ;;  %2821 = vmatpush1.msra.mxu1 %v2820_v21 }
 0x25b   : > { %2924 = vmatprep.subr.mxu0 %v5260_v25  ;;  %2827 = vmatprep.subr.mxu1 %v2826_v46 }
 0x25c   : > { %2833 = vmatpush1.msra.mxu1 %v2832_v57  ;;  %v2241_v10 = vpop.permute.xlu1 %2240 }
 0x25d   : > { %2839 = vmatprep.subr.mxu1 %v2838_v30 }
 0x25e   : > { %2845 = vmatpush1.msra.mxu1 %v2844_v56 }
 0x25f   : > { %2851 = vmatprep.subr.mxu1 %v2850_v52 }
 0x260   : > { %2857 = vmatpush1.msra.mxu1 %v2856_v53 }
 0x261   : > { %3012 = vmatprep.subr.mxu1 %v5249_v41 }
 0x2fc   : > { %v1858_v49 = vpop.f32.mrf.mxu0 }
 0x2fd   : > { %v1859_v37 = vadd.f32 %v1858_v49, %v1780_v47 }
 0x2fe   : > { %v4172_v27 = vpop.f32.mrf.mxu0 }
 0x300   : > { %v2008_v51 = vpop.f32.mrf.mxu0 }
 0x302   : > { %v4182_v2 = vpop.f32.mrf.mxu0 }
 0x304   : > { %v1934_v44 = vpop.f32.mrf.mxu1 }
 0x305   : > { %v1935_v61 = vadd.f32 %v1934_v44, %v1859_v37  ;;  %v2156_v7 = vpop.f32.mrf.mxu0  ;;  %v439_v44 = vld [vmem:[%s5608_s10 + $0x38] sm:$0xff] }
 0x306   : > { %v4177_v38 = vpop.f32.mrf.mxu1 }
 0x307   : > { %v4192_v26 = vpop.f32.mrf.mxu0  ;;  %v2009_v12 = vadd.f32 %v2008_v51, %v1935_v61 }
 0x308   : > { %v2082_v13 = vpop.f32.mrf.mxu1  ;;  %v437_v26 = vld [vmem:[%s5608_s10 + $0x28] sm:$0xff] }
 0x309   : > { %v2083_v33 = vadd.f32 %v2082_v13, %v2009_v12  ;;  %v2318_v43 = vpop.f32.mrf.mxu0  ;;  %v5364_v12 = vand.u32 4294901760, %v439_v44  ;;  %v436_v13 = vld [vmem:[%s5608_s10 + $0x20] sm:$0xff] }
 0x30a   : > { %v4187_v29 = vpop.f32.mrf.mxu1  ;;  %v2319_v22 = vadd.f32 %v2318_v43, %v2241_v10 }
 0x30b   : > { %v2157_v18 = vadd.f32 %v2156_v7, %v2083_v33  ;;  %v4202_v23 = vpop.f32.mrf.mxu0  ;;  %v438_v7 = vld [vmem:[%s5608_s10 + $0x30] sm:$0xff]  ;;  %v435_v29 = vld [vmem:[%s5608_s10 + $0x18] sm:$0xff]  ;;  %v5394_v10 = vsub.f32 %v439_v44, %v5364_v12 }
 0x30c   : > { %v2228_v14 = vpop.f32.mrf.mxu1  ;;  %v5373_v43 = vand.u32 4294901760, %v438_v7  ;;  %v434_v23 = vld [vmem:[%s5608_s10 + $0x10] sm:$0xff] }
 0x30d   : > { %v2229_v40 = vadd.f32 %v2228_v14, %v2157_v18  ;;  %v2468_v3 = vpop.f32.mrf.mxu0  ;;  %v5380_v18 = vand.u32 4294901760, %v437_v26 }
 0x30e   : > { %v4197_v11 = vpop.f32.mrf.mxu1 }
 0x30f   : > { %v3883_v24 = vmul.f32 -1.442695, %v2229_v40  ;;  %v4212_v60 = vpop.f32.mrf.mxu0  ;;  %v5387_v40 = vand.u32 4294901760, %v436_v13  ;;  %v5396_v11 = vand.u32 4294901760, %v435_v29 }
 0x310   : > { %v2394_v8 = vpop.f32.mrf.mxu1  ;;  %v5404_v60 = vsub.f32 %v438_v7, %v5373_v43 }
 0x311   : > { %4273 = vpow2.f32 %v3883_v24  ;;  %v2395_v21 = vadd.f32 %v2394_v8, %v2319_v22  ;;  %v432_v22 = vld [vmem:[%s5608_s10] sm:$0xff]  ;;  %v5406_v8 = vand.u32 4294901760, %v434_v23 }
 0x312   : > { %v4207_v6 = vpop.f32.mrf.mxu1  ;;  %v2616_v46 = vpop.f32.mrf.mxu0 }
 0x313   : > { %v2469_v62 = vadd.f32 %v2468_v3, %v2395_v21  ;;  %v433_v3 = vld [vmem:[%s5608_s10 + $0x8] sm:$0xff]  ;;  %v5410_v21 = vsub.f32 %v437_v26, %v5380_v18 }
 0x314   : > { %v2542_v57 = vpop.f32.mrf.mxu1  ;;  %v4222_v39 = vpop.f32.mrf.mxu0  ;;  %v5412_v6 = vand.u32 4294901760, %v433_v3 }
 0x315   : > { %v2543_v30 = vadd.f32 %v2542_v57, %v2469_v62  ;;  %v5416_v62 = vsub.f32 %v436_v13, %v5387_v40  ;;  %v5418_v57 = vand.u32 4294901760, %v432_v22  ;;  %v3358_v39 = vand.u32 4294901760, %v5394_v10 }
 0x316   : > { %v4217_v63 = vpop.f32.mrf.mxu1 }
 0x317   : > { %v2617_v56 = vadd.f32 %v2616_v46, %v2543_v30  ;;  %v5423_v30 = vsub.f32 %v435_v29, %v5396_v11  ;;  %v3364_v63 = vand.u32 4294901760, %v5404_v60 }
 0x318   : > { %v2688_v50 = vpop.f32.mrf.mxu1 }
 0x319   : > { %v2689_v52 = vadd.f32 %v2688_v50, %v2617_v56  ;;  %v5428_v56 = vsub.f32 %v434_v23, %v5406_v8  ;;  %v3370_v50 = vand.u32 4294901760, %v5410_v21 }
 0x31a   : > { %v4227_v53 = vpop.f32.mrf.mxu1 }
 0x31b   : > { %v3884_v49 = vmul.f32 -1.442695, %v2689_v52  ;;  %v5433_v52 = vsub.f32 %v433_v3, %v5412_v6  ;;  %v3376_v53 = vand.u32 4294901760, %v5416_v62 }
 0x31d   : > { %4275 = vpow2.f32 %v3884_v49  ;;  %v3382_v49 = vand.u32 4294901760, %v5423_v30 }
 0x31e   : > { %v4274_v27 = vpop.eup %4273 }
 0x31f   : > { %v2235_v51 = vadd.f32 1.0, %v4274_v27  ;;  %v3388_v27 = vand.u32 4294901760, %v5428_v56 }
 0x321   : > { %4277 = vrcp.f32 %v2235_v51  ;;  %v3389_v44 = vsub.f32 %v5428_v56, %v3388_v27 }
 0x323   : > { %v3390_v25 = vand.u32 4294901760, %v3389_v44 }
 0x32a   : > { %v4276_v47 = vpop.eup %4275 }
 0x32b   : > { %v2695_v2 = vadd.f32 1.0, %v4276_v47  ;;  %v3394_v47 = vand.u32 4294901760, %v5433_v52 }
 0x32d   : > { %4279 = vrcp.f32 %v2695_v2  ;;  %v3383_v2 = vsub.f32 %v5423_v30, %v3382_v49  ;;  %v3395_v26 = vsub.f32 %v5433_v52, %v3394_v47 }
 0x32e   : > { %v4278_v37 = vpop.eup %4277 }
 0x32f   : > { %v2700_v61 = vsel %vm2698_vm4, %v4278_v37, 0 }
 0x330   : > { %v5359_v38 = vand.u32 4294901760, %v2700_v61 }
 0x332   : > { %v5370_v33 = vsub.f32 %v2700_v61, %v5359_v38  ;;  %2892 = vmatmul.mubr.f32.vlgmr.msra.gmra.mxu1 %v5359_v38 }
 0x333   : > { %3014 = vmatpush1.msra.mxu1 %v5254_v1  ;;  %3059 = vmatprep.mubr.f32.mxu1 %v4344_v54 }
 0x334   : > { %3016 = vmatprep.subr.mxu1 %v5262_v31  ;;  %v2777_v14 = vand.u32 4294901760, %v5370_v33 }
 0x335   : > { %3018 = vmatpush1.msra.mxu1 %v5271_v58 }
 0x336   : > { %3020 = vmatprep.subr.mxu1 %v5281_v0  ;;  %v2778_v24 = vsub.f32 %v5370_v33, %v2777_v14 }
 0x337   : > { %3022 = vmatpush1.msra.mxu1 %v5291_v9 }
 0x338   : > { %3024 = vmatprep.subr.mxu1 %v5304_v17  ;;  %v2779_v46 = vand.u32 4294901760, %v2778_v24 }
 0x339   : > { %3026 = vmatpush1.msra.mxu1 %v5317_v32 }
 0x33a   : > { %3063 = vmatmul.mubr.f32.vlgmr.msra.gmra.mxu1 %v2777_v14  ;;  %3190 = vmatprep.subr.mxu1 %v5249_v41  ;;  %v5439_v41 = vsub.f32 %v432_v22, %v5418_v57  ;;  %v4280_v51 = vpop.eup %4279 }
 0x33b   : > { %2780 = vmatmul.mubr.f32.vlgmr.msra.gmra.mxu0 %v2779_v46  ;;  %3192 = vmatpush1.msra.mxu1 %v5254_v1  ;;  %v3359_v1 = vsub.f32 %v5394_v10, %v3358_v39  ;;  %v3246_v61 = vsel %vm2698_vm4, %v4280_v51, 0 }
 0x33c   : > { %2927 = vmatpush1.msra.mxu0 %v5269_v35  ;;  %3194 = vmatprep.subr.mxu1 %v5262_v31  ;;  %v3365_v31 = vsub.f32 %v5404_v60, %v3364_v63  ;;  %v3400_v37 = vand.u32 4294901760, %v5439_v41  ;;  %v5489_v29 = vand.u32 4294901760, %v3246_v61 }
 0x33d   : > { %2930 = vmatprep.subr.mxu0 %v5279_v59  ;;  %3196 = vmatpush1.msra.mxu1 %v5271_v58  ;;  %v3371_v58 = vsub.f32 %v5410_v21, %v3370_v50 }
 0x33e   : > { %2933 = vmatpush1.msra.mxu0 %v5289_v5  ;;  %3198 = vmatprep.subr.mxu1 %v5281_v0  ;;  %v3377_v0 = vsub.f32 %v5416_v62, %v3376_v53  ;;  %v3401_v13 = vsub.f32 %v5439_v41, %v3400_v37  ;;  %v3322_v35 = vsub.f32 %v3246_v61, %v5489_v29 }
 0x33f   : > { %2936 = vmatprep.subr.mxu0 %v5302_v16  ;;  %3200 = vmatpush1.msra.mxu1 %v5291_v9  ;;  %v3360_v9 = vand.u32 4294901760, %v3359_v1  ;;  %v3372_v7 = vand.u32 4294901760, %v3371_v58 }
 0x340   : > { %2939 = vmatpush1.msra.mxu0 %v5315_v55  ;;  %3202 = vmatprep.subr.mxu1 %v5304_v17  ;;  %v3366_v17 = vand.u32 4294901760, %v3365_v31  ;;  %v3402_v23 = vand.u32 4294901760, %v3401_v13  ;;  %v3323_v59 = vand.u32 4294901760, %v3322_v35 }
 0x341   : > { %2942 = vmatprep.subr.mxu0 %v5325_v48  ;;  %2978 = vmatprep.mubr.f32.mxu0 %v4344_v54 }
 0x342   : > { %2945 = vmatpush1.msra.mxu0 %v5333_v19  ;;  %3204 = vmatpush1.msra.mxu1 %v5317_v32  ;;  %v3378_v32 = vand.u32 4294901760, %v3377_v0 }
 0x343   : > { %3237 = vmatprep.mubr.f32.mxu1 %v4344_v54  ;;  %2981 = vmatmul.mubr.f32.vlgmr.msra.gmra.mxu0 %v5370_v33  ;;  %v3384_v33 = vand.u32 4294901760, %v3383_v2 }
 0x344   : > { %3096 = vmatprep.subr.mxu0 %v2812_v45  ;;  %3239 = vmatmul.mubr.f32.vlgmr.msra.gmra.mxu1 %v5359_v38  ;;  %v3396_v45 = vand.u32 4294901760, %v3395_v26 }
 0x345   : > { %3361 = vmatprep.subr.mxu1 %v3360_v9  ;;  %3100 = vmatpush1.msra.mxu0 %v2818_v4  ;;  %v3324_v4 = vsub.f32 %v3322_v35, %v3323_v59 }
 0x346   : > { %3367 = vmatpush1.msra.mxu1 %v3366_v17  ;;  %3104 = vmatprep.subr.mxu0 %v2824_v15 }
 0x347   : > { %3373 = vmatprep.subr.mxu1 %v3372_v7  ;;  %3108 = vmatpush1.msra.mxu0 %v2830_v34  ;;  %v3325_v5 = vand.u32 4294901760, %v3324_v4 }
 0x348   : > { %3379 = vmatpush1.msra.mxu1 %v3378_v32  ;;  %3112 = vmatprep.subr.mxu0 %v2836_v42 }
 0x349   : > { %3385 = vmatprep.subr.mxu1 %v3384_v33  ;;  %3116 = vmatpush1.msra.mxu0 %v2842_v28 }
 0x34a   : > { %3391 = vmatpush1.msra.mxu1 %v3390_v25  ;;  %3120 = vmatprep.subr.mxu0 %v2848_v36 }
 0x34b   : > { %3397 = vmatprep.subr.mxu1 %v3396_v45  ;;  %3124 = vmatpush1.msra.mxu0 %v2854_v20 }
 0x34c   : > { %3157 = vmatprep.mubr.f32.mxu0 %v4344_v54  ;;  %3403 = vmatpush1.msra.mxu1 %v3402_v23 }
 0x34d   : > { %3436 = vmatprep.mubr.f32.mxu1 %v4344_v54  ;;  %3159 = vmatmul.mubr.f32.vlgmr.msra.gmra.mxu0 %v5359_v38 }
 0x34e   : > { %3273 = vmatprep.subr.mxu0 %v5364_v12  ;;  %3438 = vmatmul.mubr.f32.vlgmr.msra.gmra.mxu1 %v5489_v29 }
 0x34f   : > { %3558 = vmatprep.subr.mxu1 %v5364_v12  ;;  %3275 = vmatpush1.msra.mxu0 %v5373_v43 }
 0x350   : > { %3560 = vmatpush1.msra.mxu1 %v5373_v43  ;;  %3277 = vmatprep.subr.mxu0 %v5380_v18 }
 0x351   : > { %3562 = vmatprep.subr.mxu1 %v5380_v18  ;;  %3279 = vmatpush1.msra.mxu0 %v5387_v40 }
 0x352   : > { %3564 = vmatpush1.msra.mxu1 %v5387_v40  ;;  %3281 = vmatprep.subr.mxu0 %v5396_v11 }
 0x353   : > { %3566 = vmatprep.subr.mxu1 %v5396_v11  ;;  %3283 = vmatpush1.msra.mxu0 %v5406_v8 }
 0x354   : > { %3568 = vmatpush1.msra.mxu1 %v5406_v8  ;;  %3285 = vmatprep.subr.mxu0 %v5412_v6 }
 0x355   : > { %3570 = vmatprep.subr.mxu1 %v5412_v6  ;;  %3287 = vmatpush1.msra.mxu0 %v5418_v57 }
 0x356   : > { %3320 = vmatprep.mubr.f32.mxu0 %v4344_v54  ;;  %3572 = vmatpush1.msra.mxu1 %v5418_v57 }
 0x357   : > { %3605 = vmatprep.mubr.f32.mxu1 %v4344_v54  ;;  %3326 = vmatmul.mubr.f32.vlgmr.msra.gmra.mxu0 %v3325_v5 }
 0x358   : > { %3470 = vmatprep.subr.mxu0 %v5394_v10  ;;  %3609 = vmatmul.mubr.f32.vlgmr.msra.gmra.mxu1 %v3323_v59 }
 0x359   : > { %3736 = vmatprep.subr.mxu1 %v5364_v12  ;;  %3473 = vmatpush1.msra.mxu0 %v5404_v60 }
 0x35a   : > { %3738 = vmatpush1.msra.mxu1 %v5373_v43  ;;  %3476 = vmatprep.subr.mxu0 %v5410_v21 }
 0x35b   : > { %3740 = vmatprep.subr.mxu1 %v5380_v18  ;;  %3479 = vmatpush1.msra.mxu0 %v5416_v62 }
 0x35c   : > { %3742 = vmatpush1.msra.mxu1 %v5387_v40  ;;  %3482 = vmatprep.subr.mxu0 %v5423_v30 }
 0x35d   : > { %3744 = vmatprep.subr.mxu1 %v5396_v11  ;;  %3485 = vmatpush1.msra.mxu0 %v5428_v56 }
 0x35e   : > { %3746 = vmatpush1.msra.mxu1 %v5406_v8  ;;  %3488 = vmatprep.subr.mxu0 %v5433_v52 }
 0x35f   : > { %3748 = vmatprep.subr.mxu1 %v5412_v6  ;;  %3491 = vmatpush1.msra.mxu0 %v5439_v41 }
 0x360   : > { %3524 = vmatprep.mubr.f32.mxu0 %v4344_v54  ;;  %3750 = vmatpush1.msra.mxu1 %v5418_v57 }
 0x361   : > { %3783 = vmatprep.mubr.f32.mxu1 %v4344_v54  ;;  %3527 = vmatmul.mubr.f32.vlgmr.msra.gmra.mxu0 %v3322_v35 }
 0x362   : > { %3642 = vmatprep.subr.mxu0 %v3358_v39  ;;  %3785 = vmatmul.mubr.f32.vlgmr.msra.gmra.mxu1 %v5489_v29 }
 0x363   : > { %3646 = vmatpush1.msra.mxu0 %v3364_v63  ;;  %3703 = vmatprep.mubr.f32.mxu0 %v4344_v54 }
 0x364   : > { %3650 = vmatprep.subr.mxu0 %v3370_v50 }
 0x365   : > { %3654 = vmatpush1.msra.mxu0 %v3376_v53 }
 0x366   : > { %3658 = vmatprep.subr.mxu0 %v3382_v49 }
 0x367   : > { %3662 = vmatpush1.msra.mxu0 %v3388_v27 }
 0x368   : > { %3666 = vmatprep.subr.mxu0 %v3394_v47 }
 0x369   : > { %3670 = vmatpush1.msra.mxu0 %v3400_v37  ;;  %v4281_v37 = vld [vmem:[%s4841_s16] sm:$0xff] }
 0x36a   : > { %3705 = vmatmul.mubr.f32.vlgmr.msra.gmra.mxu0 %v5489_v29 }
 0x3f2   : > { %v2893_v15 = vpop.f32.mrf.mxu1 }
 0x3f4   : > { %v2895_v55 = vpop.f32.mrf.mxu1 }
 0x3fa   : > { %v3064_v42 = vpop.f32.mrf.mxu1 }
 0x3fb   : > { %v2781_v54 = vpop.f32.mrf.mxu0 }
 0x3fc   : > { %v3066_v19 = vpop.f32.mrf.mxu1  ;;  %v2894_v14 = vadd.f32 %v2893_v15, %v2781_v54 }
 0x3fd   : > { %v2783_v16 = vpop.f32.mrf.mxu0 }
 0x3fe   : > { %v2896_v43 = vadd.f32 %v2895_v55, %v2783_v16 }
 0x403   : > { %v2982_v34 = vpop.f32.mrf.mxu0 }
 0x404   : > { %v3240_v36 = vpop.f32.mrf.mxu1  ;;  %v2983_v10 = vadd.f32 %v2982_v34, %v2894_v14 }
 0x405   : > { %v2984_v48 = vpop.f32.mrf.mxu0 }
 0x406   : > { %v3242_v12 = vpop.f32.mrf.mxu1  ;;  %v2985_v40 = vadd.f32 %v2984_v48, %v2896_v43  ;;  %v3065_v6 = vadd.f32 %v3064_v42, %v2983_v10 }
 0x408   : > { %v3067_v24 = vadd.f32 %v3066_v19, %v2985_v40 }
 0x40d   : > { %v3160_v28 = vpop.f32.mrf.mxu0 }
 0x40e   : > { %v3439_v18 = vpop.f32.mrf.mxu1  ;;  %v3161_v39 = vadd.f32 %v3160_v28, %v3065_v6 }
 0x40f   : > { %v3162_v20 = vpop.f32.mrf.mxu0 }
 0x410   : > { %v3441_v22 = vpop.f32.mrf.mxu1  ;;  %v3163_v46 = vadd.f32 %v3162_v20, %v3067_v24  ;;  %v3241_v41 = vadd.f32 %v3240_v36, %v3161_v39 }
 0x412   : > { %v3243_v56 = vadd.f32 %v3242_v12, %v3163_v46 }
 0x414   : > { %v3793_v27 = vcombine.low %v3241_v41, %v3243_v56 }
 0x416   : > { %v3795_v9 = vmul.f32 %v4281_v37, %v3793_v27 }
 0x417   : > { %v3327_v38 = vpop.f32.mrf.mxu0 }
 0x418   : > { %v3440_v60 = vadd.f32 %v3439_v18, %v3327_v38  ;;  %v3610_v8 = vpop.f32.mrf.mxu1 }
 0x419   : > { %v3329_v3 = vpop.f32.mrf.mxu0 }
 0x41a   : > { %v3442_v62 = vadd.f32 %v3441_v22, %v3329_v3  ;;  %v3612_v63 = vpop.f32.mrf.mxu1 }
 0x421   : > { %v3528_v11 = vpop.f32.mrf.mxu0 }
 0x422   : > { %v3529_v57 = vadd.f32 %v3528_v11, %v3440_v60  ;;  %v3786_v52 = vpop.f32.mrf.mxu1 }
 0x423   : > { %v3530_v21 = vpop.f32.mrf.mxu0 }
 0x424   : > { %v3531_v30 = vadd.f32 %v3530_v21, %v3442_v62  ;;  %v3611_v50 = vadd.f32 %v3610_v8, %v3529_v57  ;;  %v3788_v58 = vpop.f32.mrf.mxu1 }
 0x426   : > { %v3613_v49 = vadd.f32 %v3612_v63, %v3531_v30 }
 0x42a   : > { %v3706_v53 = vpop.f32.mrf.mxu0 }
 0x42b   : > { %v3707_v1 = vadd.f32 %v3706_v53, %v3611_v50 }
 0x42c   : > { %v3708_v31 = vpop.f32.mrf.mxu0 }
 0x42d   : > { %v3709_v51 = vadd.f32 %v3708_v31, %v3613_v49  ;;  %v3787_v47 = vadd.f32 %v3786_v52, %v3707_v1 }
 0x42f   : > { %v3789_v0 = vadd.f32 %v3788_v58, %v3709_v51 }
 0x431   : > { %v3798_v2 = vcombine.low %v3787_v47, %v3789_v0 }
 0x433   : > { %v3800_v17 = vmul.f32 %v3798_v2, %v3795_v9 }
 0x435   : > { %3801 = vst [vmem:[%s379_s13] sm:$0xff] %v3800_v17 }
 0x436   : > { %4295 = shalt.err (!%p4292_p3)
}
 0x437   : > { %s4296_s16 = scalar_lea.hbm %s3815_s24, 128  ;;  %s4300_s13 = scalar_lea.hbm %s5609_s11, 256 }
 0x438   : > { %p4297_p4 = scmp.ne.s32.totalorder %s3815_s24, %s4296_s16  ;;  %p4301_p9 = scmp.lt.s32.totalorder %s3815_s24, %s5609_s11 }
 0x439   : > { %p4302_p10 = scmp.lt.s32.totalorder %s4300_s13, %s4296_s16 }
 0x43a   : > { %p4298_p7 = pnand %p4297_p4, %p4446_p5 }
 0x43b   : > { %p4303_p11 = por %p4302_p10, %p4301_p9 }
 0x43c   : > { %p4299_p8 = pneg %p4298_p7 }
 0x43e   : > { %p4304_p12 = pnand %p4303_p11, %p4299_p8 }
 0x440   : > { %4307 = shalt.err (!%p4304_p12)
}
 0x441   : > { %4228 = dma.vmem_to_hbm [thread:$0]  (%p4446_p5), %s3818_s14, 128, %s3815_s24, %s3803_s25  }
 0x442 PF: > { %p4234_p13 = scmp.ge.s32.totalorder %s4342_s20, 2  ;;  %s3829_s0 = sand.u32 1, %s4330_s17  }
 0x443   : > { %s3830_s1 = scalar_lea.sflag [#allocation3], %s3829_s0 }
 0x444   : > { %p4231_p0 = pnand %p4234_p13, %p4450_p6 }
 0x446   : > { %p4232_p1 = pneg %p4231_p0 }
 0x448   : > { %4325 = dma.done.wait (%p4232_p1), %s3830_s1, 128  }
 0x449   : > { %4327 = vsyncadd (%p4232_p1), %s3830_s1, 4294967168  ;;  %p21_p2 = scmp.ge.s32.totalorder %s4433_s23, 4   ;;  %s5779_s17 = smov %s4334_s18 }
 0x44a   : > { %s5780_s18 = smov %s4338_s19  ;;  %s5781_s19 = smov %s4444_s26 }
 0x44b   : > { %s5782_s20 = smov %s4433_s23  ;;  %23 = sbr.rel (!%p21_p2) target bundleno = 6 (0x6), region = 99 }
 0x450   :  { %3835 = vsyncpa [#allocation3], 1 }
 0x451   :  { %3837 = vsyncpa [#allocation3 + $0x1], 1 }

</bundles_post_ra>
